<compile_context>
chip_gen: v7x
topology: tpu7x:2x2x1
jax: 0.10.0
libtpu: 0.0.40
codegen_flags: <defaults>
</compile_context>

<pallas_src>
import functools

import jax
import jax.numpy as jnp
from jax.experimental import pallas as pl
from jax.experimental.pallas import tpu as pltpu

TM_MAX = 512   # max pixel-rows per grid step (v6e/v7x-friendly; still fine on v5e)
LANES = 128


def _round_up(x, m):
    return (x + m - 1) // m * m


def _tm_for(m_rows):
    return min(TM_MAX, _round_up(m_rows, 128))


# ------------------------------ Pallas kernels ------------------------------ #

def conv_relu_pool_kernel(x0_ref, x1_ref, x2_ref, x3_ref, w_ref, b_ref, o_ref):
    """Fused Conv(as matmul over the 4 pooling-window corners) + MaxPool2d(2) + bias + ReLU."""
    w = w_ref[...]

    def corner(x_ref):
        return jnp.dot(x_ref[...], w, preferred_element_type=jnp.float32)

    m = jnp.maximum(jnp.maximum(corner(x0_ref), corner(x1_ref)),
                    jnp.maximum(corner(x2_ref), corner(x3_ref)))
    # bias is constant across the 4 corners, so add it (and ReLU) after the max
    o_ref[...] = jnp.maximum(m + b_ref[...], 0.0).astype(o_ref.dtype)


def matmul_bias_act_kernel(x_ref, w_ref, b_ref, o_ref, *, act):
    """One (TM, K) @ (K, N) tile with fused bias + activation (decoder sub-pixel phases)."""
    acc = jnp.dot(x_ref[...], w_ref[...], preferred_element_type=jnp.float32)
    acc = acc + b_ref[...]
    if act == "relu":
        acc = jnp.maximum(acc, 0.0)
    elif act == "sigmoid":
        acc = jax.nn.sigmoid(acc)
    o_ref[...] = acc.astype(o_ref.dtype)


# ------------------------------ layer wrappers ------------------------------ #

def conv3x3_relu_pool(x_nhwc, w_oihw, bias):
    """nn.Conv2d(k=3, s=1, p=1) + ReLU + MaxPool2d(2) fused (H, W assumed even)."""
    Cout, Cin, k, _ = w_oihw.shape
    N, H, W, _ = x_nhwc.shape
    Ho, Wo = H, W                      # stride 1, pad 1
    M = N * (Ho // 2) * (Wo // 2)      # pooled output pixels
    K = k * k * Cin

    tm = _tm_for(M)
    Mp = _round_up(M, tm)
    Kp = _round_up(K, 16)
    Np = _round_up(Cout, LANES)

    xb = jnp.pad(x_nhwc.astype(jnp.bfloat16), ((0, 0), (1, 1), (1, 1), (0, 0)))

    def corner(dy, dx):
        # patches for conv outputs at (2*ho2+dy, 2*wo2+dx): direct strided im2col
        cols = [xb[:, dy + kh: dy + kh + Ho - 1: 2, dx + kw: dx + kw + Wo - 1: 2, :]
                for kh in range(k) for kw in range(k)]
        c = jnp.stack(cols, axis=3).reshape(M, K)      # (M, k*k*Cin), (kh,kw,ci) order
        return jnp.pad(c, ((0, Mp - M), (0, Kp - K)))

    corners = [corner(dy, dx) for dy in (0, 1) for dx in (0, 1)]

    # (Cout, Cin, kh, kw) -> (kh, kw, Cin, Cout) -> (k*k*Cin, Cout): matches patch ordering
    w_mat = jnp.transpose(w_oihw, (2, 3, 1, 0)).reshape(K, Cout).astype(jnp.bfloat16)
    w_mat = jnp.pad(w_mat, ((0, Kp - K), (0, Np - Cout)))
    b = jnp.pad(bias.astype(jnp.float32), (0, Np - Cout)).reshape(1, Np)

    cost = pl.CostEstimate(
        flops=2 * 4 * Mp * Kp * Np,
        transcendentals=0,
        bytes_accessed=4 * Mp * Kp * 2 + Kp * Np * 2 + Mp * Np * 2,
    )
    out = pl.pallas_call(
        conv_relu_pool_kernel,
        out_shape=jax.ShapeDtypeStruct((Mp, Np), jnp.bfloat16),
        grid=(Mp // tm,),
        in_specs=[pl.BlockSpec((tm, Kp), lambda i: (i, 0))] * 4
                + [pl.BlockSpec((Kp, Np), lambda i: (0, 0)),
                   pl.BlockSpec((1, Np), lambda i: (0, 0))],
        out_specs=pl.BlockSpec((tm, Np), lambda i: (i, 0)),
        compiler_params=pltpu.CompilerParams(dimension_semantics=("parallel",)),
        cost_estimate=cost,
    )(*corners, w_mat, b)
    return out[:M, :Cout].reshape(N, Ho // 2, Wo // 2, Cout)


# per output-parity phase r: window offset 0 / 1 use these kernel taps (derived from
# oh = 2*ih - pad + kh with stride=2, pad=1, k=4)
_KTAPS = ((3, 1), (2, 0))


def conv_transpose4x4_s2(x_nhwc, w_iohw, bias, act, out_dtype):
    """nn.ConvTranspose2d(k=4, s=2, p=1) + fused bias + activation, sub-pixel decomposed.

    Each of the 4 output-parity phases (rh, rw) is an independent stride-1 2x2 conv over the
    (un-dilated) input -> 4x fewer FLOPs / patch bytes than zero-insertion. All 4 phases share
    one pallas_call via a leading phase grid axis.
    """
    Cin, Cout, k, _ = w_iohw.shape
    N, H, W, _ = x_nhwc.shape
    M = N * H * W
    K = 4 * Cin

    tm = _tm_for(M)
    Mp = _round_up(M, tm)
    Kp = _round_up(K, 16)
    Np = _round_up(Cout, LANES)

    xb = x_nhwc.astype(jnp.bfloat16)
    phase_x, phase_w = [], []
    for rh in (0, 1):
        for rw in (0, 1):
            ph = (1, 0) if rh == 0 else (0, 1)
            pw = (1, 0) if rw == 0 else (0, 1)
            xp = jnp.pad(xb, ((0, 0), ph, pw, (0, 0)))
            cols = [xp[:, dh:dh + H, dw:dw + W, :] for dh in range(2) for dw in range(2)]
            patches = jnp.stack(cols, axis=3).reshape(M, K)          # (M, 4*Cin)
            phase_x.append(jnp.pad(patches, ((0, Mp - M), (0, Kp - K))))
            # weight sub-matrix with (dh, dw, ci) row order matching the patches
            wsub = jnp.stack(
                [jnp.stack([w_iohw[:, :, _KTAPS[rh][dh], _KTAPS[rw][dw]]
                            for dw in range(2)], axis=0)
                 for dh in range(2)], axis=0)                        # (2, 2, Cin, Cout)
            wsub = wsub.reshape(K, Cout).astype(jnp.bfloat16)
            phase_w.append(jnp.pad(wsub, ((0, Kp - K), (0, Np - Cout))))

    x4 = jnp.stack(phase_x, axis=0)   # (4, Mp, Kp)
    w4 = jnp.stack(phase_w, axis=0)   # (4, Kp, Np)
    b = jnp.pad(bias.astype(jnp.float32), (0, Np - Cout)).reshape(1, Np)

    cost = pl.CostEstimate(
        flops=2 * 4 * Mp * Kp * Np,
        transcendentals=(4 * Mp * Np if act == "sigmoid" else 0),
        bytes_accessed=4 * Mp * Kp * 2 + 4 * Kp * Np * 2 + 4 * Mp * Np * 2,
    )
    out = pl.pallas_call(
        functools.partial(matmul_bias_act_kernel, act=act),
        out_shape=jax.ShapeDtypeStruct((4, Mp, Np), out_dtype),
        grid=(4, Mp // tm),
        in_specs=[pl.BlockSpec((None, tm, Kp), lambda p, i: (p, i, 0)),
                  pl.BlockSpec((None, Kp, Np), lambda p, i: (p, 0, 0)),
                  pl.BlockSpec((1, Np), lambda p, i: (0, 0))],
        out_specs=pl.BlockSpec((None, tm, Np), lambda p, i: (p, i, 0)),
        compiler_params=pltpu.CompilerParams(
            dimension_semantics=("parallel", "parallel")),
        cost_estimate=cost,
    )(x4, w4, b)

    out = out[:, :M, :Cout].reshape(2, 2, N, H, W, Cout)
    out = jnp.transpose(out, (2, 3, 0, 4, 1, 5)).reshape(N, 2 * H, 2 * W, Cout)
    return out


# --------------------------------- CAE model -------------------------------- #

def init_params(key, input_features=1):
    keys = jax.random.split(key, 8)

    def u(k, shape, fan_in):
        b = 1.0 / (fan_in ** 0.5)
        return jax.random.uniform(k, shape, jnp.float32, -b, b)

    p = {}
    # encoder (Conv2d weights are (Cout, Cin, k, k))
    p["w1"] = u(keys[0], (16, input_features, 3, 3), input_features * 9)
    p["b1"] = u(keys[1], (16,), input_features * 9)
    p["w2"] = u(keys[2], (64, 16, 3, 3), 16 * 9)
    p["b2"] = u(keys[3], (64,), 16 * 9)
    # decoder (ConvTranspose2d weights are (Cin, Cout, k, k))
    p["w3"] = u(keys[4], (64, 16, 4, 4), 64 * 16)
    p["b3"] = u(keys[5], (16,), 64 * 16)
    p["w4"] = u(keys[6], (16, input_features, 4, 4), 16 * 16)
    p["b4"] = u(keys[7], (input_features,), 16 * 16)
    return p


def cae_forward(x_nchw, p):
    x = jnp.transpose(x_nchw, (0, 2, 3, 1)).astype(jnp.float32)     # NCHW -> NHWC
    # encoder (conv+relu+pool fused)
    h = conv3x3_relu_pool(x, p["w1"], p["b1"])
    h = conv3x3_relu_pool(h, p["w2"], p["b2"])
    # decoder (sub-pixel decomposed transposed convs)
    h = conv_transpose4x4_s2(h, p["w3"], p["b3"], act="relu", out_dtype=jnp.bfloat16)
    h = conv_transpose4x4_s2(h, p["w4"], p["b4"], act="sigmoid", out_dtype=jnp.float32)
    return jnp.transpose(h, (0, 3, 1, 2))                           # NHWC -> NCHW


# pure-JAX reference (XLA convs) for a structural sanity check
def cae_forward_ref(x, p):
    dn = ("NCHW", "OIHW", "NCHW")

    def pool(h):
        return jax.lax.reduce_window(h, -jnp.inf, jax.lax.max,
                                     (1, 1, 2, 2), (1, 1, 2, 2), "VALID")

    h = jax.lax.conv_general_dilated(x, p["w1"], (1, 1), ((1, 1), (1, 1)),
                                     dimension_numbers=dn) + p["b1"][None, :, None, None]
    h = pool(jax.nn.relu(h))
    h = jax.lax.conv_general_dilated(h, p["w2"], (1, 1), ((1, 1), (1, 1)),
                                     dimension_numbers=dn) + p["b2"][None, :, None, None]
    h = pool(jax.nn.relu(h))
    w3 = jnp.transpose(jnp.flip(p["w3"], (2, 3)), (1, 0, 2, 3))
    h = jax.lax.conv_general_dilated(h, w3, (1, 1), ((2, 2), (2, 2)),
                                     lhs_dilation=(2, 2),
                                     dimension_numbers=dn) + p["b3"][None, :, None, None]
    h = jax.nn.relu(h)
    w4 = jnp.transpose(jnp.flip(p["w4"], (2, 3)), (1, 0, 2, 3))
    h = jax.lax.conv_general_dilated(h, w4, (1, 1), ((2, 2), (2, 2)),
                                     lhs_dilation=(2, 2),
                                     dimension_numbers=dn) + p["b4"][None, :, None, None]
    return jax.nn.sigmoid(h)


if __name__ == "__main__":
    key = jax.random.PRNGKey(0)
    pkey, xkey = jax.random.split(key)
    params = init_params(pkey, input_features=1)

    # NCHW input, like the PyTorch module (e.g. 16x16 grayscale images)
    x = jax.random.uniform(xkey, (2, 1, 16, 16), jnp.float32)

    out = jax.block_until_ready(jax.jit(cae_forward)(x, params))

    assert out.shape == (2, 1, 16, 16), out.shape
    assert bool(jnp.all(jnp.isfinite(out)))

    ref = cae_forward_ref(x, params)
    max_err = float(jnp.max(jnp.abs(out - ref)))
    assert max_err < 2e-2, f"mismatch vs reference: {max_err}"

    print("KERNEL_OK")
</pallas_src>

<mosaic_0001>
module attributes {stable_mosaic.version = 11 : i64} {
  func.func @conv_relu_pool_kernel(%arg0: i32, %arg1: memref<128x16xbf16, #tpu.memory_space<vmem>>, %arg2: memref<128x16xbf16, #tpu.memory_space<vmem>>, %arg3: memref<128x16xbf16, #tpu.memory_space<vmem>>, %arg4: memref<128x16xbf16, #tpu.memory_space<vmem>>, %arg5: memref<16x128xbf16, #tpu.memory_space<vmem>>, %arg6: memref<1x128xf32, #tpu.memory_space<vmem>>, %arg7: memref<128x128xbf16, #tpu.memory_space<vmem>>) attributes {dimension_semantics = [#tpu.dimension_semantics<parallel>], iteration_bounds = array<i64: 1>, scalar_prefetch = 0 : i64, scratch_operands = 0 : i64, tpu.core_type = #tpu.core_type<tc>, window_params = [{transform_indices = @transform_0, window_bounds = array<i64: 128, 16>}, {transform_indices = @transform_1, window_bounds = array<i64: 128, 16>}, {transform_indices = @transform_2, window_bounds = array<i64: 128, 16>}, {transform_indices = @transform_3, window_bounds = array<i64: 128, 16>}, {pipeline_mode = #tpu.pipeline_mode<synchronous>, transform_indices = @transform_4, window_bounds = array<i64: 16, 128>}, {pipeline_mode = #tpu.pipeline_mode<synchronous>, transform_indices = @transform_5, window_bounds = array<i64: 1, 128>}, {transform_indices = @transform_6, window_bounds = array<i64: 128, 128>}]} {
    %c0 = arith.constant 0 : index
    %c0_0 = arith.constant 0 : index
    %0 = vector.load %arg5[%c0, %c0_0] : memref<16x128xbf16, #tpu.memory_space<vmem>>, vector<16x128xbf16>
    %c0_1 = arith.constant 0 : index
    %c0_2 = arith.constant 0 : index
    %1 = vector.load %arg1[%c0_1, %c0_2] : memref<128x16xbf16, #tpu.memory_space<vmem>>, vector<128x16xbf16>
    %cst = arith.constant dense<0.000000e+00> : vector<128x128xf32>
    %2 = tpu.matmul %1, %0, %cst {dimension_numbers = #tpu.dot_dimension_numbers<[1], [0], [0], [1], [0, 0, 1, 1], [], []>} : vector<128x16xbf16>, vector<16x128xbf16>, vector<128x128xf32> -> vector<128x128xf32>
    %c0_3 = arith.constant 0 : index
    %c0_4 = arith.constant 0 : index
    %3 = vector.load %arg2[%c0_3, %c0_4] : memref<128x16xbf16, #tpu.memory_space<vmem>>, vector<128x16xbf16>
    %cst_5 = arith.constant dense<0.000000e+00> : vector<128x128xf32>
    %4 = tpu.matmul %3, %0, %cst_5 {dimension_numbers = #tpu.dot_dimension_numbers<[1], [0], [0], [1], [0, 0, 1, 1], [], []>} : vector<128x16xbf16>, vector<16x128xbf16>, vector<128x128xf32> -> vector<128x128xf32>
    %5 = arith.maximumf %2, %4 : vector<128x128xf32>
    %c0_6 = arith.constant 0 : index
    %c0_7 = arith.constant 0 : index
    %6 = vector.load %arg3[%c0_6, %c0_7] : memref<128x16xbf16, #tpu.memory_space<vmem>>, vector<128x16xbf16>
    %cst_8 = arith.constant dense<0.000000e+00> : vector<128x128xf32>
    %7 = tpu.matmul %6, %0, %cst_8 {dimension_numbers = #tpu.dot_dimension_numbers<[1], [0], [0], [1], [0, 0, 1, 1], [], []>} : vector<128x16xbf16>, vector<16x128xbf16>, vector<128x128xf32> -> vector<128x128xf32>
    %c0_9 = arith.constant 0 : index
    %c0_10 = arith.constant 0 : index
    %8 = vector.load %arg4[%c0_9, %c0_10] : memref<128x16xbf16, #tpu.memory_space<vmem>>, vector<128x16xbf16>
    %cst_11 = arith.constant dense<0.000000e+00> : vector<128x128xf32>
    %9 = tpu.matmul %8, %0, %cst_11 {dimension_numbers = #tpu.dot_dimension_numbers<[1], [0], [0], [1], [0, 0, 1, 1], [], []>} : vector<128x16xbf16>, vector<16x128xbf16>, vector<128x128xf32> -> vector<128x128xf32>
    %10 = arith.maximumf %7, %9 : vector<128x128xf32>
    %11 = arith.maximumf %5, %10 : vector<128x128xf32>
    %c0_12 = arith.constant 0 : index
    %c0_13 = arith.constant 0 : index
    %12 = vector.load %arg6[%c0_12, %c0_13] : memref<1x128xf32, #tpu.memory_space<vmem>>, vector<1x128xf32>
    %13 = vector.broadcast %12 : vector<1x128xf32> to vector<128x128xf32>
    %14 = arith.addf %11, %13 : vector<128x128xf32>
    %cst_14 = arith.constant 0.000000e+00 : f32
    %15 = vector.broadcast %cst_14 : f32 to vector<128x128xf32>
    %16 = arith.maximumf %14, %15 : vector<128x128xf32>
    %17 = arith.truncf %16 : vector<128x128xf32> to vector<128x128xbf16>
    %c0_15 = arith.constant 0 : index
    %c0_16 = arith.constant 0 : index
    %18 = vector.load %arg7[%c0_15, %c0_16] : memref<128x128xbf16, #tpu.memory_space<vmem>>, vector<128x128xbf16>
    tpu.vector_store %arg7[%c0_15, %c0_16], %17 {strides = array<i32>} : memref<128x128xbf16, #tpu.memory_space<vmem>>, vector<128x128xbf16>,
    return
  }
  func.func @transform_0(%arg0: i32) -> (i32, i32) {
    %c0_i32 = arith.constant 0 : i32
    %c0_i32_0 = arith.constant 0 : i32
    return %arg0, %c0_i32 : i32, i32
  }
  func.func @transform_1(%arg0: i32) -> (i32, i32) {
    %c0_i32 = arith.constant 0 : i32
    %c0_i32_0 = arith.constant 0 : i32
    return %arg0, %c0_i32 : i32, i32
  }
  func.func @transform_2(%arg0: i32) -> (i32, i32) {
    %c0_i32 = arith.constant 0 : i32
    %c0_i32_0 = arith.constant 0 : i32
    return %arg0, %c0_i32 : i32, i32
  }
  func.func @transform_3(%arg0: i32) -> (i32, i32) {
    %c0_i32 = arith.constant 0 : i32
    %c0_i32_0 = arith.constant 0 : i32
    return %arg0, %c0_i32 : i32, i32
  }
  func.func @transform_4(%arg0: i32) -> (i32, i32) {
    %c0_i32 = arith.constant 0 : i32
    %c0_i32_0 = arith.constant 0 : i32
    %c0_i32_1 = arith.constant 0 : i32
    return %c0_i32, %c0_i32_0 : i32, i32
  }
  func.func @transform_5(%arg0: i32) -> (i32, i32) {
    %c0_i32 = arith.constant 0 : i32
    %c0_i32_0 = arith.constant 0 : i32
    %c0_i32_1 = arith.constant 0 : i32
    return %c0_i32, %c0_i32_0 : i32, i32
  }
  func.func @transform_6(%arg0: i32) -> (i32, i32) {
    %c0_i32 = arith.constant 0 : i32
    %c0_i32_0 = arith.constant 0 : i32
    return %arg0, %c0_i32 : i32, i32
  }
}

module attributes {stable_mosaic.version = 11 : i64} {
  func.func @conv_relu_pool_kernel(%arg0: i32, %arg1: memref<128x144xbf16, #tpu.memory_space<vmem>>, %arg2: memref<128x144xbf16, #tpu.memory_space<vmem>>, %arg3: memref<128x144xbf16, #tpu.memory_space<vmem>>, %arg4: memref<128x144xbf16, #tpu.memory_space<vmem>>, %arg5: memref<144x128xbf16, #tpu.memory_space<vmem>>, %arg6: memref<1x128xf32, #tpu.memory_space<vmem>>, %arg7: memref<128x128xbf16, #tpu.memory_space<vmem>>) attributes {dimension_semantics = [#tpu.dimension_semantics<parallel>], iteration_bounds = array<i64: 1>, scalar_prefetch = 0 : i64, scratch_operands = 0 : i64, tpu.core_type = #tpu.core_type<tc>, window_params = [{transform_indices = @transform_0, window_bounds = array<i64: 128, 144>}, {transform_indices = @transform_1, window_bounds = array<i64: 128, 144>}, {transform_indices = @transform_2, window_bounds = array<i64: 128, 144>}, {transform_indices = @transform_3, window_bounds = array<i64: 128, 144>}, {pipeline_mode = #tpu.pipeline_mode<synchronous>, transform_indices = @transform_4, window_bounds = array<i64: 144, 128>}, {pipeline_mode = #tpu.pipeline_mode<synchronous>, transform_indices = @transform_5, window_bounds = array<i64: 1, 128>}, {transform_indices = @transform_6, window_bounds = array<i64: 128, 128>}]} {
    %c0 = arith.constant 0 : index
    %c0_0 = arith.constant 0 : index
    %0 = vector.load %arg5[%c0, %c0_0] : memref<144x128xbf16, #tpu.memory_space<vmem>>, vector<144x128xbf16>
    %c0_1 = arith.constant 0 : index
    %c0_2 = arith.constant 0 : index
    %1 = vector.load %arg1[%c0_1, %c0_2] : memref<128x144xbf16, #tpu.memory_space<vmem>>, vector<128x144xbf16>
    %cst = arith.constant dense<0.000000e+00> : vector<128x128xf32>
    %2 = tpu.matmul %1, %0, %cst {dimension_numbers = #tpu.dot_dimension_numbers<[1], [0], [0], [1], [0, 0, 1, 1], [], []>} : vector<128x144xbf16>, vector<144x128xbf16>, vector<128x128xf32> -> vector<128x128xf32>
    %c0_3 = arith.constant 0 : index
    %c0_4 = arith.constant 0 : index
    %3 = vector.load %arg2[%c0_3, %c0_4] : memref<128x144xbf16, #tpu.memory_space<vmem>>, vector<128x144xbf16>
    %cst_5 = arith.constant dense<0.000000e+00> : vector<128x128xf32>
    %4 = tpu.matmul %3, %0, %cst_5 {dimension_numbers = #tpu.dot_dimension_numbers<[1], [0], [0], [1], [0, 0, 1, 1], [], []>} : vector<128x144xbf16>, vector<144x128xbf16>, vector<128x128xf32> -> vector<128x128xf32>
    %5 = arith.maximumf %2, %4 : vector<128x128xf32>
    %c0_6 = arith.constant 0 : index
    %c0_7 = arith.constant 0 : index
    %6 = vector.load %arg3[%c0_6, %c0_7] : memref<128x144xbf16, #tpu.memory_space<vmem>>, vector<128x144xbf16>
    %cst_8 = arith.constant dense<0.000000e+00> : vector<128x128xf32>
    %7 = tpu.matmul %6, %0, %cst_8 {dimension_numbers = #tpu.dot_dimension_numbers<[1], [0], [0], [1], [0, 0, 1, 1], [], []>} : vector<128x144xbf16>, vector<144x128xbf16>, vector<128x128xf32> -> vector<128x128xf32>
    %c0_9 = arith.constant 0 : index
    %c0_10 = arith.constant 0 : index
    %8 = vector.load %arg4[%c0_9, %c0_10] : memref<128x144xbf16, #tpu.memory_space<vmem>>, vector<128x144xbf16>
    %cst_11 = arith.constant dense<0.000000e+00> : vector<128x128xf32>
    %9 = tpu.matmul %8, %0, %cst_11 {dimension_numbers = #tpu.dot_dimension_numbers<[1], [0], [0], [1], [0, 0, 1, 1], [], []>} : vector<128x144xbf16>, vector<144x128xbf16>, vector<128x128xf32> -> vector<128x128xf32>
    %10 = arith.maximumf %7, %9 : vector<128x128xf32>
    %11 = arith.maximumf %5, %10 : vector<128x128xf32>
    %c0_12 = arith.constant 0 : index
    %c0_13 = arith.constant 0 : index
    %12 = vector.load %arg6[%c0_12, %c0_13] : memref<1x128xf32, #tpu.memory_space<vmem>>, vector<1x128xf32>
    %13 = vector.broadcast %12 : vector<1x128xf32> to vector<128x128xf32>
    %14 = arith.addf %11, %13 : vector<128x128xf32>
    %cst_14 = arith.constant 0.000000e+00 : f32
    %15 = vector.broadcast %cst_14 : f32 to vector<128x128xf32>
    %16 = arith.maximumf %14, %15 : vector<128x128xf32>
    %17 = arith.truncf %16 : vector<128x128xf32> to vector<128x128xbf16>
    %c0_15 = arith.constant 0 : index
    %c0_16 = arith.constant 0 : index
    %18 = vector.load %arg7[%c0_15, %c0_16] : memref<128x128xbf16, #tpu.memory_space<vmem>>, vector<128x128xbf16>
    tpu.vector_store %arg7[%c0_15, %c0_16], %17 {strides = array<i32>} : memref<128x128xbf16, #tpu.memory_space<vmem>>, vector<128x128xbf16>,
    return
  }
  func.func @transform_0(%arg0: i32) -> (i32, i32) {
    %c0_i32 = arith.constant 0 : i32
    %c0_i32_0 = arith.constant 0 : i32
    return %arg0, %c0_i32 : i32, i32
  }
  func.func @transform_1(%arg0: i32) -> (i32, i32) {
    %c0_i32 = arith.constant 0 : i32
    %c0_i32_0 = arith.constant 0 : i32
    return %arg0, %c0_i32 : i32, i32
  }
  func.func @transform_2(%arg0: i32) -> (i32, i32) {
    %c0_i32 = arith.constant 0 : i32
    %c0_i32_0 = arith.constant 0 : i32
    return %arg0, %c0_i32 : i32, i32
  }
  func.func @transform_3(%arg0: i32) -> (i32, i32) {
    %c0_i32 = arith.constant 0 : i32
    %c0_i32_0 = arith.constant 0 : i32
    return %arg0, %c0_i32 : i32, i32
  }
  func.func @transform_4(%arg0: i32) -> (i32, i32) {
    %c0_i32 = arith.constant 0 : i32
    %c0_i32_0 = arith.constant 0 : i32
    %c0_i32_1 = arith.constant 0 : i32
    return %c0_i32, %c0_i32_0 : i32, i32
  }
  func.func @transform_5(%arg0: i32) -> (i32, i32) {
    %c0_i32 = arith.constant 0 : i32
    %c0_i32_0 = arith.constant 0 : i32
    %c0_i32_1 = arith.constant 0 : i32
    return %c0_i32, %c0_i32_0 : i32, i32
  }
  func.func @transform_6(%arg0: i32) -> (i32, i32) {
    %c0_i32 = arith.constant 0 : i32
    %c0_i32_0 = arith.constant 0 : i32
    return %arg0, %c0_i32 : i32, i32
  }
}

module attributes {stable_mosaic.version = 11 : i64} {
  func.func @matmul_bias_act_kernel(%arg0: i32, %arg1: i32, %arg2: memref<1x128x256xbf16, #tpu.memory_space<vmem>>, %arg3: memref<1x256x128xbf16, #tpu.memory_space<vmem>>, %arg4: memref<1x128xf32, #tpu.memory_space<vmem>>, %arg5: memref<1x128x128xbf16, #tpu.memory_space<vmem>>) attributes {dimension_semantics = [#tpu.dimension_semantics<parallel>, #tpu.dimension_semantics<parallel>], iteration_bounds = array<i64: 4, 1>, scalar_prefetch = 0 : i64, scratch_operands = 0 : i64, tpu.core_type = #tpu.core_type<tc>, window_params = [{transform_indices = @transform_0, window_bounds = array<i64: 1, 128, 256>}, {transform_indices = @transform_1, window_bounds = array<i64: 1, 256, 128>}, {pipeline_mode = #tpu.pipeline_mode<synchronous>, transform_indices = @transform_2, window_bounds = array<i64: 1, 128>}, {transform_indices = @transform_3, window_bounds = array<i64: 1, 128, 128>}]} {
    %c0 = arith.constant 0 : index
    %c0_0 = arith.constant 0 : index
    %c0_1 = arith.constant 0 : index
    %0 = vector.load %arg2[%c0, %c0_0, %c0_1] : memref<1x128x256xbf16, #tpu.memory_space<vmem>>, vector<1x128x256xbf16>
    %1 = vector.shape_cast %0 : vector<1x128x256xbf16> to vector<128x256xbf16>
    %c0_2 = arith.constant 0 : index
    %c0_3 = arith.constant 0 : index
    %c0_4 = arith.constant 0 : index
    %2 = vector.load %arg3[%c0_2, %c0_3, %c0_4] : memref<1x256x128xbf16, #tpu.memory_space<vmem>>, vector<1x256x128xbf16>
    %3 = vector.shape_cast %2 : vector<1x256x128xbf16> to vector<256x128xbf16>
    %cst = arith.constant dense<0.000000e+00> : vector<128x128xf32>
    %4 = tpu.matmul %1, %3, %cst {dimension_numbers = #tpu.dot_dimension_numbers<[1], [0], [0], [1], [0, 0, 1, 1], [], []>} : vector<128x256xbf16>, vector<256x128xbf16>, vector<128x128xf32> -> vector<128x128xf32>
    %c0_5 = arith.constant 0 : index
    %c0_6 = arith.constant 0 : index
    %5 = vector.load %arg4[%c0_5, %c0_6] : memref<1x128xf32, #tpu.memory_space<vmem>>, vector<1x128xf32>
    %6 = vector.broadcast %5 : vector<1x128xf32> to vector<128x128xf32>
    %7 = arith.addf %4, %6 : vector<128x128xf32>
    %cst_7 = arith.constant 0.000000e+00 : f32
    %8 = vector.broadcast %cst_7 : f32 to vector<128x128xf32>
    %9 = arith.maximumf %7, %8 : vector<128x128xf32>
    %10 = arith.truncf %9 : vector<128x128xf32> to vector<128x128xbf16>
    %c0_8 = arith.constant 0 : index
    %c0_9 = arith.constant 0 : index
    %c0_10 = arith.constant 0 : index
    %11 = vector.load %arg5[%c0_8, %c0_9, %c0_10] : memref<1x128x128xbf16, #tpu.memory_space<vmem>>, vector<1x128x128xbf16>
    %12 = vector.shape_cast %11 : vector<1x128x128xbf16> to vector<128x128xbf16>
    %13 = vector.shape_cast %10 : vector<128x128xbf16> to vector<1x128x128xbf16>
    tpu.vector_store %arg5[%c0_8, %c0_9, %c0_10], %13 {strides = array<i32>} : memref<1x128x128xbf16, #tpu.memory_space<vmem>>, vector<1x128x128xbf16>,
    return
  }
  func.func @transform_0(%arg0: i32, %arg1: i32) -> (i32, i32, i32) {
    %c0_i32 = arith.constant 0 : i32
    %c0_i32_0 = arith.constant 0 : i32
    return %arg0, %arg1, %c0_i32 : i32, i32, i32
  }
  func.func @transform_1(%arg0: i32, %arg1: i32) -> (i32, i32, i32) {
    %c0_i32 = arith.constant 0 : i32
    %c0_i32_0 = arith.constant 0 : i32
    %c0_i32_1 = arith.constant 0 : i32
    return %arg0, %c0_i32, %c0_i32_0 : i32, i32, i32
  }
  func.func @transform_2(%arg0: i32, %arg1: i32) -> (i32, i32) {
    %c0_i32 = arith.constant 0 : i32
    %c0_i32_0 = arith.constant 0 : i32
    %c0_i32_1 = arith.constant 0 : i32
    return %c0_i32, %c0_i32_0 : i32, i32
  }
  func.func @transform_3(%arg0: i32, %arg1: i32) -> (i32, i32, i32) {
    %c0_i32 = arith.constant 0 : i32
    %c0_i32_0 = arith.constant 0 : i32
    return %arg0, %arg1, %c0_i32 : i32, i32, i32
  }
}

module attributes {stable_mosaic.version = 11 : i64} {
  func.func @matmul_bias_act_kernel(%arg0: i32, %arg1: i32, %arg2: memref<1x128x64xbf16, #tpu.memory_space<vmem>>, %arg3: memref<1x64x128xbf16, #tpu.memory_space<vmem>>, %arg4: memref<1x128xf32, #tpu.memory_space<vmem>>, %arg5: memref<1x128x128xf32, #tpu.memory_space<vmem>>) attributes {dimension_semantics = [#tpu.dimension_semantics<parallel>, #tpu.dimension_semantics<parallel>], iteration_bounds = array<i64: 4, 1>, scalar_prefetch = 0 : i64, scratch_operands = 0 : i64, tpu.core_type = #tpu.core_type<tc>, window_params = [{transform_indices = @transform_0, window_bounds = array<i64: 1, 128, 64>}, {transform_indices = @transform_1, window_bounds = array<i64: 1, 64, 128>}, {pipeline_mode = #tpu.pipeline_mode<synchronous>, transform_indices = @transform_2, window_bounds = array<i64: 1, 128>}, {transform_indices = @transform_3, window_bounds = array<i64: 1, 128, 128>}]} {
    %c0 = arith.constant 0 : index
    %c0_0 = arith.constant 0 : index
    %c0_1 = arith.constant 0 : index
    %0 = vector.load %arg2[%c0, %c0_0, %c0_1] : memref<1x128x64xbf16, #tpu.memory_space<vmem>>, vector<1x128x64xbf16>
    %1 = vector.shape_cast %0 : vector<1x128x64xbf16> to vector<128x64xbf16>
    %c0_2 = arith.constant 0 : index
    %c0_3 = arith.constant 0 : index
    %c0_4 = arith.constant 0 : index
    %2 = vector.load %arg3[%c0_2, %c0_3, %c0_4] : memref<1x64x128xbf16, #tpu.memory_space<vmem>>, vector<1x64x128xbf16>
    %3 = vector.shape_cast %2 : vector<1x64x128xbf16> to vector<64x128xbf16>
    %cst = arith.constant dense<0.000000e+00> : vector<128x128xf32>
    %4 = tpu.matmul %1, %3, %cst {dimension_numbers = #tpu.dot_dimension_numbers<[1], [0], [0], [1], [0, 0, 1, 1], [], []>} : vector<128x64xbf16>, vector<64x128xbf16>, vector<128x128xf32> -> vector<128x128xf32>
    %c0_5 = arith.constant 0 : index
    %c0_6 = arith.constant 0 : index
    %5 = vector.load %arg4[%c0_5, %c0_6] : memref<1x128xf32, #tpu.memory_space<vmem>>, vector<1x128xf32>
    %6 = vector.broadcast %5 : vector<1x128xf32> to vector<128x128xf32>
    %7 = arith.addf %4, %6 : vector<128x128xf32>
    %8 = arith.negf %7 : vector<128x128xf32>
    %9 = math.exp %8 : vector<128x128xf32>
    %cst_7 = arith.constant 1.000000e+00 : f32
    %10 = vector.broadcast %cst_7 : f32 to vector<128x128xf32>
    %11 = arith.addf %10, %9 : vector<128x128xf32>
    %12 = arith.divf %10, %11 : vector<128x128xf32>
    %c0_8 = arith.constant 0 : index
    %c0_9 = arith.constant 0 : index
    %c0_10 = arith.constant 0 : index
    %13 = vector.load %arg5[%c0_8, %c0_9, %c0_10] : memref<1x128x128xf32, #tpu.memory_space<vmem>>, vector<1x128x128xf32>
    %14 = vector.shape_cast %13 : vector<1x128x128xf32> to vector<128x128xf32>
    %15 = vector.shape_cast %12 : vector<128x128xf32> to vector<1x128x128xf32>
    tpu.vector_store %arg5[%c0_8, %c0_9, %c0_10], %15 {strides = array<i32>} : memref<1x128x128xf32, #tpu.memory_space<vmem>>, vector<1x128x128xf32>,
    return
  }
  func.func @transform_0(%arg0: i32, %arg1: i32) -> (i32, i32, i32) {
    %c0_i32 = arith.constant 0 : i32
    %c0_i32_0 = arith.constant 0 : i32
    return %arg0, %arg1, %c0_i32 : i32, i32, i32
  }
  func.func @transform_1(%arg0: i32, %arg1: i32) -> (i32, i32, i32) {
    %c0_i32 = arith.constant 0 : i32
    %c0_i32_0 = arith.constant 0 : i32
    %c0_i32_1 = arith.constant 0 : i32
    return %arg0, %c0_i32, %c0_i32_0 : i32, i32, i32
  }
  func.func @transform_2(%arg0: i32, %arg1: i32) -> (i32, i32) {
    %c0_i32 = arith.constant 0 : i32
    %c0_i32_0 = arith.constant 0 : i32
    %c0_i32_1 = arith.constant 0 : i32
    return %c0_i32, %c0_i32_0 : i32, i32
  }
  func.func @transform_3(%arg0: i32, %arg1: i32) -> (i32, i32, i32) {
    %c0_i32 = arith.constant 0 : i32
    %c0_i32_0 = arith.constant 0 : i32
    return %arg0, %arg1, %c0_i32 : i32, i32, i32
  }
}

</mosaic_0001>

<bundles_post_ra>
// kernel: cae_forward.4
= control target key start
LH: loop header
LB: loop body
LE: loop exit
PB: predicated region body
PF: predicated region fallthrough
CT: control target
= control target key end

     0   :  { %vm88_vm0 = vcmask 130048   ;;  %s1517_s4 = inlined_call_operand.vmem [shape: bf16[16,128], index: 4, kind: input, shape index: {}]   ;;  %s1518_s0 = inlined_call_operand.vmem [shape: bf16[128,16], index: 0, kind: input, shape index: {}]   ;;  %s1519_s1 = inlined_call_operand.vmem [shape: bf16[128,16], index: 1, kind: input, shape index: {}]   ;;  %s1520_s2 = inlined_call_operand.vmem [shape: bf16[128,16], index: 2, kind: input, shape index: {}]   ;;  %s1521_s3 = inlined_call_operand.vmem [shape: bf16[128,16], index: 3, kind: input, shape index: {}]   ;;  %s1522_s5 = inlined_call_operand.vmem [shape: f32[1,128], index: 5, kind: input, shape index: {}]   ;;  %s1523_s6 = inlined_call_operand.vmem [shape: bf16[128,128], index: 6, kind: output, shape index: {}]  }
   0x1   :  { %v1165_v0 = vld [vmem:[%s1517_s4] sm:$0xff]   ;;  %v1168_v3 = vld [vmem:[%s1518_s0 + $0x8] sm:$0xff]   ;;  %v1170_v5 = vld [vmem:[%s1518_s0 + $0x10] sm:$0xff]  }
   0x2   :  { %v1166_v1 = vld [vmem:[%s1518_s0] sm:$0xff]   ;;  %1093 = vmatprep.subr.bf16.mxu0 %v1165_v0  ;;  %1111 = vmatprep.subr.bf16.mxu1 %v1165_v0  ;;  %v1169_v4 = vld [vmem:[%s1519_s1 + $0x8] sm:$0xff]   ;;  %v1171_v6 = vld [vmem:[%s1519_s1 + $0x10] sm:$0xff]  }
   0x3   :  { %v1167_v2 = vld [vmem:[%s1519_s1] sm:$0xff]   ;;  %1094 = vmatpush3.bf16.msra.mxu0 %v1165_v0  ;;  %1112 = vmatpush3.bf16.msra.mxu1 %v1165_v0  ;;  %v1172_v7 = vld [vmem:[%s1518_s0 + $0x18] sm:$0xff]   ;;  %v1176_v11 = vld [vmem:[%s1518_s0 + $0x28] sm:$0xff]  }
   0x4   :  { %1095 = vmatprep.mubr.msk.bf16.mxu0 %vm88_vm0, %v1166_v1  ;;  %1113 = vmatprep.mubr.msk.bf16.mxu1 %vm88_vm0, %v1167_v2  ;;  %v1173_v8 = vld [vmem:[%s1519_s1 + $0x18] sm:$0xff]   ;;  %v1174_v9 = vld [vmem:[%s1518_s0 + $0x20] sm:$0xff]   ;;  %v1177_v12 = vld [vmem:[%s1519_s1 + $0x28] sm:$0xff]  }
   0x5   :  { %1129 = vmatprep.subr.bf16.mxu0 %v1165_v0  ;;  %1147 = vmatprep.subr.bf16.mxu1 %v1165_v0  ;;  %v1175_v10 = vld [vmem:[%s1519_s1 + $0x20] sm:$0xff]   ;;  %v1178_v13 = vld [vmem:[%s1518_s0 + $0x30] sm:$0xff]   ;;  %v1180_v15 = vld [vmem:[%s1518_s0 + $0x38] sm:$0xff]  }
   0x6   :  { %1096 = vmatmul.mubr.msk.bf16.vlgmr.msra.gmra.mrb[0].mxu0 %vm88_vm0, %v1168_v3  ;;  %1114 = vmatmul.mubr.msk.bf16.vlgmr.msra.gmra.mrb[0].mxu1 %vm88_vm0, %v1169_v4  ;;  %v1179_v14 = vld [vmem:[%s1519_s1 + $0x30] sm:$0xff]   ;;  %v1181_v16 = vld [vmem:[%s1519_s1 + $0x38] sm:$0xff]   ;;  %v1182_v17 = vld [vmem:[%s1520_s2] sm:$0xff]  }
   0x7   :  { %1130 = vmatpush3.bf16.msra.mxu0 %v1165_v0  ;;  %1148 = vmatpush3.bf16.msra.mxu1 %v1165_v0  ;;  %v1183_v18 = vld [vmem:[%s1521_s3] sm:$0xff]   ;;  %v1184_v19 = vld [vmem:[%s1520_s2 + $0x8] sm:$0xff]   ;;  %v1186_v21 = vld [vmem:[%s1520_s2 + $0x10] sm:$0xff]  }
   0x8   :  { %1099 = vmatprep.mubr.msk.bf16.mxu0 %vm88_vm0, %v1170_v5  ;;  %1117 = vmatprep.mubr.msk.bf16.mxu1 %vm88_vm0, %v1171_v6  ;;  %v1185_v20 = vld [vmem:[%s1521_s3 + $0x8] sm:$0xff]   ;;  %v1187_v22 = vld [vmem:[%s1521_s3 + $0x10] sm:$0xff]   ;;  %v1188_v23 = vld [vmem:[%s1520_s2 + $0x18] sm:$0xff]  }
   0x9   :  { %v1189_v24 = vld [vmem:[%s1521_s3 + $0x18] sm:$0xff]   ;;  %v1190_v25 = vld [vmem:[%s1520_s2 + $0x20] sm:$0xff]   ;;  %v1192_v27 = vld [vmem:[%s1520_s2 + $0x28] sm:$0xff]  }
   0xa   :  { %v1191_v26 = vld [vmem:[%s1521_s3 + $0x20] sm:$0xff]   ;;  %v1193_v28 = vld [vmem:[%s1521_s3 + $0x28] sm:$0xff]   ;;  %v1194_v29 = vld [vmem:[%s1520_s2 + $0x30] sm:$0xff]  }
   0xb   :  { %v1195_v30 = vld [vmem:[%s1521_s3 + $0x30] sm:$0xff]   ;;  %v1196_v31 = vld [vmem:[%s1520_s2 + $0x38] sm:$0xff]  }
   0xc   :  { %v1197_v32 = vld [vmem:[%s1521_s3 + $0x38] sm:$0xff]  }
   0xe   :  { %1100 = vmatmul.mubr.msk.bf16.gmra.mrb[4].mxu0 %vm88_vm0, %v1172_v7  ;;  %1118 = vmatmul.mubr.msk.bf16.gmra.mrb[4].mxu1 %vm88_vm0, %v1173_v8 }
   0xf   :  { %1103 = vmatprep.mubr.msk.bf16.mxu0 %vm88_vm0, %v1174_v9  ;;  %1121 = vmatprep.mubr.msk.bf16.mxu1 %vm88_vm0, %v1175_v10 }
  0x16   :  { %1104 = vmatmul.mubr.msk.bf16.gmra.mrb[8].mxu0 %vm88_vm0, %v1176_v11  ;;  %1122 = vmatmul.mubr.msk.bf16.gmra.mrb[8].mxu1 %vm88_vm0, %v1177_v12 }
  0x17   :  { %1107 = vmatprep.mubr.msk.bf16.mxu0 %vm88_vm0, %v1178_v13  ;;  %1125 = vmatprep.mubr.msk.bf16.mxu1 %vm88_vm0, %v1179_v14 }
  0x1e   :  { %1108 = vmatmul.mubr.msk.bf16.gmra.mrb[12].mxu0 %vm88_vm0, %v1180_v15  ;;  %1126 = vmatmul.mubr.msk.bf16.gmra.mrb[12].mxu1 %vm88_vm0, %v1181_v16 }
  0x1f   :  { %1131 = vmatprep.mubr.msk.bf16.mxu0 %vm88_vm0, %v1182_v17  ;;  %1149 = vmatprep.mubr.msk.bf16.mxu1 %vm88_vm0, %v1183_v18 }
  0x26   :  { %1132 = vmatmul.mubr.msk.bf16.vlgmr.msra.gmra.mrb[16].mxu0 %vm88_vm0, %v1184_v19  ;;  %1150 = vmatmul.mubr.msk.bf16.vlgmr.msra.gmra.mrb[16].mxu1 %vm88_vm0, %v1185_v20 }
  0x27   :  { %1135 = vmatprep.mubr.msk.bf16.mxu0 %vm88_vm0, %v1186_v21  ;;  %1153 = vmatprep.mubr.msk.bf16.mxu1 %vm88_vm0, %v1187_v22  ;;  %v1439_v22 = vld [vmem:[%s1522_s5] ss:$0 sm:$0xff] }
  0x2e   :  { %1136 = vmatmul.mubr.msk.bf16.gmra.mrb[20].mxu0 %vm88_vm0, %v1188_v23  ;;  %1154 = vmatmul.mubr.msk.bf16.gmra.mrb[20].mxu1 %vm88_vm0, %v1189_v24 }
  0x2f   :  { %1139 = vmatprep.mubr.msk.bf16.mxu0 %vm88_vm0, %v1190_v25  ;;  %1157 = vmatprep.mubr.msk.bf16.mxu1 %vm88_vm0, %v1191_v26 }
  0x36   :  { %1140 = vmatmul.mubr.msk.bf16.gmra.mrb[24].mxu0 %vm88_vm0, %v1192_v27  ;;  %1158 = vmatmul.mubr.msk.bf16.gmra.mrb[24].mxu1 %vm88_vm0, %v1193_v28 }
  0x37   :  { %1143 = vmatprep.mubr.msk.bf16.mxu0 %vm88_vm0, %v1194_v29  ;;  %1161 = vmatprep.mubr.msk.bf16.mxu1 %vm88_vm0, %v1195_v30 }
  0x3e   :  { %1144 = vmatmul.mubr.msk.bf16.gmra.mrb[28].mxu0 %vm88_vm0, %v1196_v31  ;;  %1162 = vmatmul.mubr.msk.bf16.gmra.mrb[28].mxu1 %vm88_vm0, %v1197_v32 }
  0xd9   :  { %v1097_v33 = vpop.f32.mrb[0].mxu0  ;;  %v1115_v34 = vpop.f32.mrb[0].mxu1 }
  0xda   :  { %v389_v35 = vmax.f32 %v1097_v33, %v1115_v34  ;;  %v147_v36 = vpop.f32.mrb[1].mxu0  ;;  %v324_v37 = vpop.f32.mrb[1].mxu1 }
  0xdb   :  { %v387_v38 = vmax.f32 %v147_v36, %v324_v37  ;;  %v1098_v39 = vpop.f32.mrb[2].mxu0  ;;  %v1116_v40 = vpop.f32.mrb[2].mxu1 }
  0xdc   :  { %v390_v41 = vmax.f32 %v1098_v39, %v1116_v40  ;;  %v150_v42 = vpop.f32.mrb[3].mxu0  ;;  %v327_v43 = vpop.f32.mrb[3].mxu1 }
  0xdd   :  { %v388_v44 = vmax.f32 %v150_v42, %v327_v43 }
  0xe1   :  { %v1364_v45 = vpop.f32.mrb[4].mxu0  ;;  %v1366_v46 = vpop.f32.mrb[4].mxu1 }
  0xe2   :  { %v393_v47 = vmax.f32 %v1364_v45, %v1366_v46  ;;  %v1370_v48 = vpop.f32.mrb[5].mxu0  ;;  %v1372_v49 = vpop.f32.mrb[5].mxu1 }
  0xe3   :  { %v391_v50 = vmax.f32 %v1370_v48, %v1372_v49  ;;  %v1376_v51 = vpop.f32.mrb[6].mxu0  ;;  %v1378_v52 = vpop.f32.mrb[6].mxu1 }
  0xe4   :  { %v394_v53 = vmax.f32 %v1376_v51, %v1378_v52  ;;  %v1382_v54 = vpop.f32.mrb[7].mxu0  ;;  %v1384_v55 = vpop.f32.mrb[7].mxu1 }
  0xe5   :  { %v392_v56 = vmax.f32 %v1382_v54, %v1384_v55 }
  0xe9   :  { %v1388_v57 = vpop.f32.mrb[8].mxu0  ;;  %v1390_v58 = vpop.f32.mrb[8].mxu1 }
  0xea   :  { %v397_v59 = vmax.f32 %v1388_v57, %v1390_v58  ;;  %v1394_v60 = vpop.f32.mrb[9].mxu0  ;;  %v1396_v61 = vpop.f32.mrb[9].mxu1 }
  0xeb   :  { %v395_v62 = vmax.f32 %v1394_v60, %v1396_v61  ;;  %v1400_v63 = vpop.f32.mrb[10].mxu0  ;;  %v1402_v0 = vpop.f32.mrb[10].mxu1 }
  0xec   :  { %v398_v1 = vmax.f32 %v1400_v63, %v1402_v0  ;;  %v1406_v2 = vpop.f32.mrb[11].mxu0  ;;  %v1408_v3 = vpop.f32.mrb[11].mxu1 }
  0xed   :  { %v396_v4 = vmax.f32 %v1406_v2, %v1408_v3 }
  0xf1   :  { %v1412_v5 = vpop.f32.mrb[12].mxu0  ;;  %v1414_v6 = vpop.f32.mrb[12].mxu1 }
  0xf2   :  { %v401_v7 = vmax.f32 %v1412_v5, %v1414_v6  ;;  %v1418_v8 = vpop.f32.mrb[13].mxu0  ;;  %v1420_v9 = vpop.f32.mrb[13].mxu1 }
  0xf3   :  { %v399_v10 = vmax.f32 %v1418_v8, %v1420_v9  ;;  %v1424_v11 = vpop.f32.mrb[14].mxu0  ;;  %v1426_v12 = vpop.f32.mrb[14].mxu1 }
  0xf4   :  { %v402_v13 = vmax.f32 %v1424_v11, %v1426_v12  ;;  %v1430_v14 = vpop.f32.mrb[15].mxu0  ;;  %v1432_v15 = vpop.f32.mrb[15].mxu1 }
  0xf5   :  { %v400_v16 = vmax.f32 %v1430_v14, %v1432_v15 }
  0xf9   :  { %v1133_v17 = vpop.f32.mrb[16].mxu0  ;;  %v1151_v18 = vpop.f32.mrb[16].mxu1 }
  0xfa   :  { %v759_v19 = vmax.f32 %v1133_v17, %v1151_v18  ;;  %v517_v20 = vpop.f32.mrb[17].mxu0  ;;  %v694_v21 = vpop.f32.mrb[17].mxu1 }
  0xfb   :  { %v757_v23 = vmax.f32 %v517_v20, %v694_v21  ;;  %v1134_v24 = vpop.f32.mrb[18].mxu0  ;;  %v1152_v25 = vpop.f32.mrb[18].mxu1 }
  0xfc   :  { %v775_v26 = vmax.f32 %v389_v35, %v759_v19  ;;  %v760_v27 = vmax.f32 %v1134_v24, %v1152_v25  ;;  %v520_v28 = vpop.f32.mrb[19].mxu0  ;;  %v697_v29 = vpop.f32.mrb[19].mxu1 }
  0xfd   :  { %v773_v30 = vmax.f32 %v387_v38, %v757_v23  ;;  %v758_v31 = vmax.f32 %v520_v28, %v697_v29 }
  0xfe   :  { %v798_v32 = vadd.f32 %v1439_v22, %v775_v26  ;;  %v776_v33 = vmax.f32 %v390_v41, %v760_v27 }
  0xff   :  { %v796_v34 = vadd.f32 %v1439_v22, %v773_v30  ;;  %v774_v36 = vmax.f32 %v388_v44, %v758_v31 }
 0x100   :  { %v799_v37 = vadd.f32 %v1439_v22, %v776_v33  ;;  %v814_v43 = vmax.f32 %v798_v32, 0.0 }
 0x101   :  { %v797_v39 = vadd.f32 %v1439_v22, %v774_v36  ;;  %v1137_v40 = vpop.f32.mrb[20].mxu0  ;;  %v1155_v42 = vpop.f32.mrb[20].mxu1  ;;  %v812_v20 = vmax.f32 %v796_v34, 0.0 }
 0x102   :  { %v815_v17 = vmax.f32 %v799_v37, 0.0  ;;  %v763_v35 = vmax.f32 %v1137_v40, %v1155_v42  ;;  %v533_v18 = vpop.f32.mrb[21].mxu0  ;;  %v710_v19 = vpop.f32.mrb[21].mxu1 }
 0x103   :  { %v813_v38 = vmax.f32 %v797_v39, 0.0  ;;  %v761_v21 = vmax.f32 %v533_v18, %v710_v19  ;;  %v1138_v23 = vpop.f32.mrb[22].mxu0  ;;  %v1156_v24 = vpop.f32.mrb[22].mxu1 }
 0x104   :  { %v1018_v41 = vpack.c.bf16 %v815_v17, %v814_v43  ;;  %v779_v44 = vmax.f32 %v393_v47, %v763_v35  ;;  %v764_v25 = vmax.f32 %v1138_v23, %v1156_v24  ;;  %v536_v26 = vpop.f32.mrb[23].mxu0  ;;  %v713_v27 = vpop.f32.mrb[23].mxu1 }
 0x105   :  { %v1013_v28 = vpack.c.bf16 %v813_v38, %v812_v20  ;;  %v777_v29 = vmax.f32 %v391_v50, %v761_v21  ;;  %v762_v30 = vmax.f32 %v536_v26, %v713_v27 }
 0x106   :  { %1050 = vst [vmem:[%s1523_s6 + $0x8] sm:$0xff] %v1018_v41   ;;  %v802_v31 = vadd.f32 %v1439_v22, %v779_v44  ;;  %v780_v45 = vmax.f32 %v394_v53, %v764_v25 }
 0x107   :  { %1014 = vst [vmem:[%s1523_s6] sm:$0xff] %v1013_v28   ;;  %v800_v46 = vadd.f32 %v1439_v22, %v777_v29  ;;  %v778_v47 = vmax.f32 %v392_v56, %v762_v30 }
 0x108   :  { %v803_v48 = vadd.f32 %v1439_v22, %v780_v45  ;;  %v818_v33 = vmax.f32 %v802_v31, 0.0 }
 0x109   :  { %v801_v49 = vadd.f32 %v1439_v22, %v778_v47  ;;  %v1141_v50 = vpop.f32.mrb[24].mxu0  ;;  %v1159_v32 = vpop.f32.mrb[24].mxu1  ;;  %v816_v36 = vmax.f32 %v800_v46, 0.0 }
 0x10a   :  { %v819_v34 = vmax.f32 %v803_v48, 0.0  ;;  %v767_v51 = vmax.f32 %v1141_v50, %v1159_v32  ;;  %v549_v52 = vpop.f32.mrb[25].mxu0  ;;  %v726_v53 = vpop.f32.mrb[25].mxu1 }
 0x10b   :  { %v817_v37 = vmax.f32 %v801_v49, 0.0  ;;  %v765_v39 = vmax.f32 %v549_v52, %v726_v53  ;;  %v1142_v40 = vpop.f32.mrb[26].mxu0  ;;  %v1160_v42 = vpop.f32.mrb[26].mxu1 }
 0x10c   :  { %v1028_v43 = vpack.c.bf16 %v819_v34, %v818_v33  ;;  %v783_v54 = vmax.f32 %v397_v59, %v767_v51  ;;  %v768_v55 = vmax.f32 %v1142_v40, %v1160_v42  ;;  %v552_v56 = vpop.f32.mrb[27].mxu0  ;;  %v729_v17 = vpop.f32.mrb[27].mxu1 }
 0x10d   :  { %v1023_v35 = vpack.c.bf16 %v817_v37, %v816_v36  ;;  %v781_v18 = vmax.f32 %v395_v62, %v765_v39  ;;  %v766_v19 = vmax.f32 %v552_v56, %v729_v17 }
 0x10e   :  { %1052 = vst [vmem:[%s1523_s6 + $0x18] sm:$0xff] %v1028_v43   ;;  %v806_v20 = vadd.f32 %v1439_v22, %v783_v54  ;;  %v784_v57 = vmax.f32 %v398_v1, %v768_v55 }
 0x10f   :  { %1051 = vst [vmem:[%s1523_s6 + $0x10] sm:$0xff] %v1023_v35   ;;  %v804_v58 = vadd.f32 %v1439_v22, %v781_v18  ;;  %v782_v59 = vmax.f32 %v396_v4, %v766_v19 }
 0x110   :  { %v807_v60 = vadd.f32 %v1439_v22, %v784_v57  ;;  %v822_v21 = vmax.f32 %v806_v20, 0.0 }
 0x111   :  { %v805_v61 = vadd.f32 %v1439_v22, %v782_v59  ;;  %v1145_v62 = vpop.f32.mrb[28].mxu0  ;;  %v1163_v38 = vpop.f32.mrb[28].mxu1  ;;  %v820_v24 = vmax.f32 %v804_v58, 0.0 }
 0x112   :  { %v823_v23 = vmax.f32 %v807_v60, 0.0  ;;  %v771_v63 = vmax.f32 %v1145_v62, %v1163_v38  ;;  %v565_v0 = vpop.f32.mrb[29].mxu0  ;;  %v742_v1 = vpop.f32.mrb[29].mxu1 }
 0x113   :  { %v821_v41 = vmax.f32 %v805_v61, 0.0  ;;  %v769_v44 = vmax.f32 %v565_v0, %v742_v1  ;;  %v1146_v25 = vpop.f32.mrb[30].mxu0  ;;  %v1164_v26 = vpop.f32.mrb[30].mxu1 }
 0x114   :  { %v1038_v27 = vpack.c.bf16 %v823_v23, %v822_v21  ;;  %v787_v2 = vmax.f32 %v401_v7, %v771_v63  ;;  %v772_v3 = vmax.f32 %v1146_v25, %v1164_v26  ;;  %v568_v4 = vpop.f32.mrb[31].mxu0  ;;  %v745_v28 = vpop.f32.mrb[31].mxu1 }
 0x115   :  { %v1033_v29 = vpack.c.bf16 %v821_v41, %v820_v24  ;;  %v785_v30 = vmax.f32 %v399_v10, %v769_v44  ;;  %v770_v31 = vmax.f32 %v568_v4, %v745_v28 }
 0x116   :  { %1054 = vst [vmem:[%s1523_s6 + $0x28] sm:$0xff] %v1038_v27   ;;  %v810_v45 = vadd.f32 %v1439_v22, %v787_v2  ;;  %v788_v5 = vmax.f32 %v402_v13, %v772_v3 }
 0x117   :  { %1053 = vst [vmem:[%s1523_s6 + $0x20] sm:$0xff] %v1033_v29   ;;  %v808_v6 = vadd.f32 %v1439_v22, %v785_v30  ;;  %v786_v7 = vmax.f32 %v400_v16, %v770_v31 }
 0x118   :  { %v811_v8 = vadd.f32 %v1439_v22, %v788_v5  ;;  %v826_v10 = vmax.f32 %v810_v45, 0.0 }
 0x119   :  { %v809_v9 = vadd.f32 %v1439_v22, %v786_v7  ;;  %v824_v47 = vmax.f32 %v808_v6, 0.0 }
 0x11a   :  { %v827_v46 = vmax.f32 %v811_v8, 0.0 }
 0x11b   :  { %v825_v48 = vmax.f32 %v809_v9, 0.0 }
 0x11c   :  { %v1048_v11 = vpack.c.bf16 %v827_v46, %v826_v10 }
 0x11d   :  { %v1043_v12 = vpack.c.bf16 %v825_v48, %v824_v47 }
 0x11e   :  { %1056 = vst [vmem:[%s1523_s6 + $0x38] sm:$0xff] %v1048_v11  }
 0x11f   :  { %1055 = vst [vmem:[%s1523_s6 + $0x30] sm:$0xff] %v1043_v12  }

// kernel: cae_forward.5
= control target key start
LH: loop header
LB: loop body
LE: loop exit
PB: predicated region body
PF: predicated region fallthrough
CT: control target
= control target key end

     0   :  { %v1395_v0 = vmov 0   ;;  %vm184_vm0 = vcmask 130048   ;;  %s1955_s4 = inlined_call_operand.vmem [shape: bf16[144,128], index: 4, kind: input, shape index: {}]   ;;  %s1956_s0 = inlined_call_operand.vmem [shape: bf16[128,144], index: 0, kind: input, shape index: {}]   ;;  %s1957_s1 = inlined_call_operand.vmem [shape: bf16[128,144], index: 1, kind: input, shape index: {}]   ;;  %s1958_s2 = inlined_call_operand.vmem [shape: bf16[128,144], index: 2, kind: input, shape index: {}]   ;;  %s1959_s3 = inlined_call_operand.vmem [shape: bf16[128,144], index: 3, kind: input, shape index: {}]   ;;  %s1960_s5 = inlined_call_operand.vmem [shape: f32[1,128], index: 5, kind: input, shape index: {}]   ;;  %s1961_s6 = inlined_call_operand.vmem [shape: bf16[128,128], index: 6, kind: output, shape index: {}]  }
   0x1   :  { %209 = vmatprep.subr.bf16.mxu0 %v1395_v0  ;;  %418 = vmatprep.subr.bf16.mxu1 %v1395_v0  ;;  %v1290_v1 = vld [vmem:[%s1955_s4] sm:$0xff]   ;;  %v1439_v2 = vld [vmem:[%s1955_s4 + $0x8] sm:$0xff]   ;;  %v1448_v3 = vld [vmem:[%s1955_s4 + $0x10] sm:$0xff]  }
   0x2   :  { %210 = vmatpush1.bf16.msra.mxu0 %v1290_v1  ;;  %419 = vmatpush1.bf16.msra.mxu1 %v1290_v1  ;;  %v1455_v4 = vld [vmem:[%s1955_s4 + $0x18] sm:$0xff]   ;;  %v1301_v5 = vld [vmem:[%s1956_s0 + $0x4] ss:$8 sps:$4 sm:$0xff]   ;;  %v1492_v9 = vld [vmem:[%s1955_s4 + $0x30] sm:$0xff]  }
   0x3   :  { %211 = vmatprep.subr.bf16.mxu0 %v1395_v0  ;;  %420 = vmatprep.subr.bf16.mxu1 %v1395_v0  ;;  %v1304_v6 = vld [vmem:[%s1957_s1 + $0x4] ss:$8 sps:$4 sm:$0xff]   ;;  %v1501_v10 = vld [vmem:[%s1955_s4 + $0x38] sm:$0xff]   ;;  %v1299_v12 = vld [vmem:[%s1956_s0] ss:$8 sps:$4 sm:$0xff]  }
   0x4   :  { %1129 = vmatprep.mubr.msk.bf16.mxu0 %vm184_vm0, %v1301_v5  ;;  %1153 = vmatprep.mubr.msk.bf16.mxu1 %vm184_vm0, %v1304_v6  ;;  %v1474_v7 = vld [vmem:[%s1955_s4 + $0x20] sm:$0xff]   ;;  %v1483_v8 = vld [vmem:[%s1955_s4 + $0x28] sm:$0xff]   ;;  %v1305_v14 = vld [vmem:[%s1956_s0 + $0x14] ss:$8 sps:$4 sm:$0xff]  }
   0x5   :  { %v1510_v11 = vld [vmem:[%s1955_s4 + $0x40] sm:$0xff]   ;;  %v1307_v15 = vld [vmem:[%s1957_s1 + $0x14] ss:$8 sps:$4 sm:$0xff]   ;;  %v1309_v16 = vld [vmem:[%s1956_s0 + $0x10] ss:$8 sps:$4 sm:$0xff]  }
   0x6   :  { %212 = vmatpush1.bf16.msra.mxu0 %v1439_v2  ;;  %421 = vmatpush1.bf16.msra.mxu1 %v1439_v2  ;;  %v1302_v13 = vld [vmem:[%s1957_s1] ss:$8 sps:$4 sm:$0xff]   ;;  %v1310_v17 = vld [vmem:[%s1957_s1 + $0x10] ss:$8 sps:$4 sm:$0xff]   ;;  %v1311_v18 = vld [vmem:[%s1956_s0 + $0x24] ss:$8 sps:$4 sm:$0xff]  }
   0x7   :  { %213 = vmatprep.subr.bf16.mxu0 %v1395_v0  ;;  %422 = vmatprep.subr.bf16.mxu1 %v1395_v0  ;;  %v1313_v19 = vld [vmem:[%s1957_s1 + $0x24] ss:$8 sps:$4 sm:$0xff]   ;;  %v1315_v20 = vld [vmem:[%s1956_s0 + $0x20] ss:$8 sps:$4 sm:$0xff]   ;;  %v1317_v22 = vld [vmem:[%s1956_s0 + $0x34] ss:$8 sps:$4 sm:$0xff]  }
   0x8   :  { %v1316_v21 = vld [vmem:[%s1957_s1 + $0x20] ss:$8 sps:$4 sm:$0xff]   ;;  %v1319_v23 = vld [vmem:[%s1957_s1 + $0x34] ss:$8 sps:$4 sm:$0xff]   ;;  %v1321_v24 = vld [vmem:[%s1956_s0 + $0x30] ss:$8 sps:$4 sm:$0xff]  }
   0x9   :  { %v1322_v25 = vld [vmem:[%s1957_s1 + $0x30] ss:$8 sps:$4 sm:$0xff]   ;;  %v1323_v26 = vld [vmem:[%s1956_s0 + $0x44] ss:$8 sps:$4 sm:$0xff]   ;;  %v1327_v28 = vld [vmem:[%s1956_s0 + $0x40] ss:$8 sps:$4 sm:$0xff]  }
   0xa   :  { %214 = vmatpush1.bf16.msra.mxu0 %v1448_v3  ;;  %423 = vmatpush1.bf16.msra.mxu1 %v1448_v3  ;;  %v1325_v27 = vld [vmem:[%s1957_s1 + $0x44] ss:$8 sps:$4 sm:$0xff]   ;;  %v1328_v29 = vld [vmem:[%s1957_s1 + $0x40] ss:$8 sps:$4 sm:$0xff]   ;;  %v1329_v30 = vld [vmem:[%s1956_s0 + $0x54] ss:$8 sps:$4 sm:$0xff]  }
   0xb   :  { %215 = vmatprep.subr.bf16.mxu0 %v1395_v0  ;;  %424 = vmatprep.subr.bf16.mxu1 %v1395_v0  ;;  %v1331_v31 = vld [vmem:[%s1957_s1 + $0x54] ss:$8 sps:$4 sm:$0xff]   ;;  %v1333_v32 = vld [vmem:[%s1956_s0 + $0x50] ss:$8 sps:$4 sm:$0xff]   ;;  %v1335_v34 = vld [vmem:[%s1956_s0 + $0x64] ss:$8 sps:$4 sm:$0xff]  }
   0xc   :  { %v1334_v33 = vld [vmem:[%s1957_s1 + $0x50] ss:$8 sps:$4 sm:$0xff]   ;;  %v1337_v35 = vld [vmem:[%s1957_s1 + $0x64] ss:$8 sps:$4 sm:$0xff]   ;;  %v1339_v36 = vld [vmem:[%s1956_s0 + $0x60] ss:$8 sps:$4 sm:$0xff]  }
   0xd   :  { %v1340_v37 = vld [vmem:[%s1957_s1 + $0x60] ss:$8 sps:$4 sm:$0xff]   ;;  %v1341_v38 = vld [vmem:[%s1956_s0 + $0x74] ss:$8 sps:$4 sm:$0xff]   ;;  %v1345_v40 = vld [vmem:[%s1956_s0 + $0x70] ss:$8 sps:$4 sm:$0xff]  }
   0xe   :  { %216 = vmatpush1.bf16.msra.mxu0 %v1455_v4  ;;  %425 = vmatpush1.bf16.msra.mxu1 %v1455_v4  ;;  %v1343_v39 = vld [vmem:[%s1957_s1 + $0x74] ss:$8 sps:$4 sm:$0xff]   ;;  %v1346_v41 = vld [vmem:[%s1957_s1 + $0x70] ss:$8 sps:$4 sm:$0xff]   ;;  %v1349_v42 = vld [vmem:[%s1958_s2 + $0x4] ss:$8 sps:$4 sm:$0xff]  }
   0xf   :  { %217 = vmatprep.subr.bf16.mxu0 %v1395_v0  ;;  %426 = vmatprep.subr.bf16.mxu1 %v1395_v0  ;;  %v1352_v43 = vld [vmem:[%s1959_s3 + $0x4] ss:$8 sps:$4 sm:$0xff]   ;;  %v1347_v44 = vld [vmem:[%s1958_s2] ss:$8 sps:$4 sm:$0xff]   ;;  %v1353_v46 = vld [vmem:[%s1958_s2 + $0x14] ss:$8 sps:$4 sm:$0xff]  }
  0x10   :  { %v1350_v45 = vld [vmem:[%s1959_s3] ss:$8 sps:$4 sm:$0xff]   ;;  %v1355_v47 = vld [vmem:[%s1959_s3 + $0x14] ss:$8 sps:$4 sm:$0xff]   ;;  %v1357_v48 = vld [vmem:[%s1958_s2 + $0x10] ss:$8 sps:$4 sm:$0xff]  }
  0x11   :  { %v1358_v49 = vld [vmem:[%s1959_s3 + $0x10] ss:$8 sps:$4 sm:$0xff]   ;;  %v1359_v50 = vld [vmem:[%s1958_s2 + $0x24] ss:$8 sps:$4 sm:$0xff]   ;;  %v1363_v52 = vld [vmem:[%s1958_s2 + $0x20] ss:$8 sps:$4 sm:$0xff]  }
  0x12   :  { %218 = vmatpush1.bf16.msra.mxu0 %v1474_v7  ;;  %427 = vmatpush1.bf16.msra.mxu1 %v1474_v7  ;;  %v1361_v51 = vld [vmem:[%s1959_s3 + $0x24] ss:$8 sps:$4 sm:$0xff]   ;;  %v1364_v53 = vld [vmem:[%s1959_s3 + $0x20] ss:$8 sps:$4 sm:$0xff]   ;;  %v1365_v54 = vld [vmem:[%s1958_s2 + $0x34] ss:$8 sps:$4 sm:$0xff]  }
  0x13   :  { %219 = vmatprep.subr.bf16.mxu0 %v1395_v0  ;;  %428 = vmatprep.subr.bf16.mxu1 %v1395_v0  ;;  %v1367_v55 = vld [vmem:[%s1959_s3 + $0x34] ss:$8 sps:$4 sm:$0xff]   ;;  %v1369_v56 = vld [vmem:[%s1958_s2 + $0x30] ss:$8 sps:$4 sm:$0xff]   ;;  %v1371_v58 = vld [vmem:[%s1958_s2 + $0x44] ss:$8 sps:$4 sm:$0xff]  }
  0x14   :  { %v1370_v57 = vld [vmem:[%s1959_s3 + $0x30] ss:$8 sps:$4 sm:$0xff]   ;;  %v1373_v59 = vld [vmem:[%s1959_s3 + $0x44] ss:$8 sps:$4 sm:$0xff]   ;;  %v1375_v60 = vld [vmem:[%s1958_s2 + $0x40] ss:$8 sps:$4 sm:$0xff]  }
  0x15   :  { %v1376_v61 = vld [vmem:[%s1959_s3 + $0x40] ss:$8 sps:$4 sm:$0xff]   ;;  %v1377_v62 = vld [vmem:[%s1958_s2 + $0x54] ss:$8 sps:$4 sm:$0xff]  }
  0x16   :  { %220 = vmatpush1.bf16.msra.mxu0 %v1483_v8  ;;  %429 = vmatpush1.bf16.msra.mxu1 %v1483_v8  ;;  %v1379_v63 = vld [vmem:[%s1959_s3 + $0x54] ss:$8 sps:$4 sm:$0xff]   ;;  %v1388_v5 = vld [vmem:[%s1959_s3 + $0x60] ss:$8 sps:$4 sm:$0xff]  }
  0x17   :  { %221 = vmatprep.subr.bf16.mxu0 %v1395_v0  ;;  %430 = vmatprep.subr.bf16.mxu1 %v1395_v0  ;;  %v1389_v6 = vld [vmem:[%s1958_s2 + $0x74] ss:$8 sps:$4 sm:$0xff]  }
  0x1a   :  { %222 = vmatpush1.bf16.msra.mxu0 %v1492_v9  ;;  %431 = vmatpush1.bf16.msra.mxu1 %v1492_v9 }
  0x1b   :  { %223 = vmatprep.subr.bf16.mxu0 %v1395_v0  ;;  %432 = vmatprep.subr.bf16.mxu1 %v1395_v0 }
  0x1e   :  { %224 = vmatpush1.bf16.msra.mxu0 %v1501_v10  ;;  %433 = vmatpush1.bf16.msra.mxu1 %v1501_v10 }
  0x1f   :  { %225 = vmatprep.subr.bf16.mxu0 %v1395_v0  ;;  %434 = vmatprep.subr.bf16.mxu1 %v1395_v0 }
  0x22   :  { %226 = vmatpush1.bf16.msra.mxu0 %v1510_v11  ;;  %435 = vmatpush1.bf16.msra.mxu1 %v1510_v11 }
  0x23   :  { %643 = vmatprep.subr.bf16.mxu0 %v1395_v0  ;;  %852 = vmatprep.subr.bf16.mxu1 %v1395_v0 }
  0x25   :  { %242 = vmatmul.mubr.bf16.vlgmr.msra.gmra.mrb[0].mxu0 %v1299_v12  ;;  %451 = vmatmul.mubr.bf16.vlgmr.msra.gmra.mrb[0].mxu1 %v1302_v13 }
  0x26   :  { %644 = vmatpush1.bf16.msra.mxu0 %v1290_v1  ;;  %853 = vmatpush1.bf16.msra.mxu1 %v1290_v1  ;;  %v1382_v1 = vld [vmem:[%s1959_s3 + $0x50] ss:$8 sps:$4 sm:$0xff]  }
  0x27   :  { %1130 = vmatprep.mubr.msk.bf16.mxu0 %vm184_vm0, %v1305_v14  ;;  %1154 = vmatprep.mubr.msk.bf16.mxu1 %vm184_vm0, %v1307_v15 }
  0x28   :  { %645 = vmatprep.subr.bf16.mxu0 %v1395_v0  ;;  %854 = vmatprep.subr.bf16.mxu1 %v1395_v0 }
  0x2a   :  { %646 = vmatpush1.bf16.msra.mxu0 %v1439_v2  ;;  %855 = vmatpush1.bf16.msra.mxu1 %v1439_v2  ;;  %v1383_v2 = vld [vmem:[%s1958_s2 + $0x64] ss:$8 sps:$4 sm:$0xff]  }
  0x2b   :  { %647 = vmatprep.subr.bf16.mxu0 %v1395_v0  ;;  %856 = vmatprep.subr.bf16.mxu1 %v1395_v0 }
  0x2d   :  { %250 = vmatmul.mubr.bf16.gmra.mrb[4].mxu0 %v1309_v16  ;;  %459 = vmatmul.mubr.bf16.gmra.mrb[4].mxu1 %v1310_v17 }
  0x2e   :  { %1131 = vmatprep.mubr.msk.bf16.mxu0 %vm184_vm0, %v1311_v18  ;;  %1155 = vmatprep.mubr.msk.bf16.mxu1 %vm184_vm0, %v1313_v19 }
  0x2f   :  { %648 = vmatpush1.bf16.msra.mxu0 %v1448_v3  ;;  %857 = vmatpush1.bf16.msra.mxu1 %v1448_v3  ;;  %v1385_v3 = vld [vmem:[%s1959_s3 + $0x64] ss:$8 sps:$4 sm:$0xff]  }
  0x30   :  { %649 = vmatprep.subr.bf16.mxu0 %v1395_v0  ;;  %858 = vmatprep.subr.bf16.mxu1 %v1395_v0 }
  0x33   :  { %650 = vmatpush1.bf16.msra.mxu0 %v1455_v4  ;;  %859 = vmatpush1.bf16.msra.mxu1 %v1455_v4  ;;  %v1387_v4 = vld [vmem:[%s1958_s2 + $0x60] ss:$8 sps:$4 sm:$0xff]  }
  0x34   :  { %651 = vmatprep.subr.bf16.mxu0 %v1395_v0  ;;  %860 = vmatprep.subr.bf16.mxu1 %v1395_v0 }
  0x35   :  { %258 = vmatmul.mubr.bf16.gmra.mrb[8].mxu0 %v1315_v20  ;;  %467 = vmatmul.mubr.bf16.gmra.mrb[8].mxu1 %v1316_v21 }
  0x36   :  { %1132 = vmatprep.mubr.msk.bf16.mxu0 %vm184_vm0, %v1317_v22  ;;  %1156 = vmatprep.mubr.msk.bf16.mxu1 %vm184_vm0, %v1319_v23 }
  0x37   :  { %652 = vmatpush1.bf16.msra.mxu0 %v1474_v7  ;;  %861 = vmatpush1.bf16.msra.mxu1 %v1474_v7  ;;  %v1391_v7 = vld [vmem:[%s1959_s3 + $0x74] ss:$8 sps:$4 sm:$0xff]  }
  0x38   :  { %653 = vmatprep.subr.bf16.mxu0 %v1395_v0  ;;  %862 = vmatprep.subr.bf16.mxu1 %v1395_v0 }
  0x3b   :  { %654 = vmatpush1.bf16.msra.mxu0 %v1483_v8  ;;  %863 = vmatpush1.bf16.msra.mxu1 %v1483_v8  ;;  %v1393_v8 = vld [vmem:[%s1958_s2 + $0x70] ss:$8 sps:$4 sm:$0xff]  }
  0x3c   :  { %655 = vmatprep.subr.bf16.mxu0 %v1395_v0  ;;  %864 = vmatprep.subr.bf16.mxu1 %v1395_v0 }
  0x3d   :  { %266 = vmatmul.mubr.bf16.gmra.mrb[12].mxu0 %v1321_v24  ;;  %475 = vmatmul.mubr.bf16.gmra.mrb[12].mxu1 %v1322_v25 }
  0x3e   :  { %1133 = vmatprep.mubr.msk.bf16.mxu0 %vm184_vm0, %v1323_v26  ;;  %1157 = vmatprep.mubr.msk.bf16.mxu1 %vm184_vm0, %v1325_v27 }
  0x3f   :  { %656 = vmatpush1.bf16.msra.mxu0 %v1492_v9  ;;  %865 = vmatpush1.bf16.msra.mxu1 %v1492_v9  ;;  %v1394_v9 = vld [vmem:[%s1959_s3 + $0x70] ss:$8 sps:$4 sm:$0xff]  }
  0x40   :  { %657 = vmatprep.subr.bf16.mxu0 %v1395_v0  ;;  %866 = vmatprep.subr.bf16.mxu1 %v1395_v0 }
  0x43   :  { %658 = vmatpush1.bf16.msra.mxu0 %v1501_v10  ;;  %867 = vmatpush1.bf16.msra.mxu1 %v1501_v10 }
  0x44   :  { %659 = vmatprep.subr.bf16.mxu0 %v1395_v0  ;;  %868 = vmatprep.subr.bf16.mxu1 %v1395_v0  ;;  %v1381_v0 = vld [vmem:[%s1958_s2 + $0x50] ss:$8 sps:$4 sm:$0xff]  }
  0x45   :  { %274 = vmatmul.mubr.bf16.gmra.mrb[16].mxu0 %v1327_v28  ;;  %483 = vmatmul.mubr.bf16.gmra.mrb[16].mxu1 %v1328_v29 }
  0x46   :  { %1134 = vmatprep.mubr.msk.bf16.mxu0 %vm184_vm0, %v1329_v30  ;;  %1158 = vmatprep.mubr.msk.bf16.mxu1 %vm184_vm0, %v1331_v31 }
  0x47   :  { %660 = vmatpush1.bf16.msra.mxu0 %v1510_v11  ;;  %869 = vmatpush1.bf16.msra.mxu1 %v1510_v11 }
  0x4d   :  { %282 = vmatmul.mubr.bf16.gmra.mrb[20].mxu0 %v1333_v32  ;;  %491 = vmatmul.mubr.bf16.gmra.mrb[20].mxu1 %v1334_v33 }
  0x4e   :  { %1135 = vmatprep.mubr.msk.bf16.mxu0 %vm184_vm0, %v1335_v34  ;;  %1159 = vmatprep.mubr.msk.bf16.mxu1 %vm184_vm0, %v1337_v35 }
  0x55   :  { %290 = vmatmul.mubr.bf16.gmra.mrb[24].mxu0 %v1339_v36  ;;  %499 = vmatmul.mubr.bf16.gmra.mrb[24].mxu1 %v1340_v37 }
  0x56   :  { %1136 = vmatprep.mubr.msk.bf16.mxu0 %vm184_vm0, %v1341_v38  ;;  %1160 = vmatprep.mubr.msk.bf16.mxu1 %vm184_vm0, %v1343_v39 }
  0x5d   :  { %298 = vmatmul.mubr.bf16.gmra.mrb[28].mxu0 %v1345_v40  ;;  %507 = vmatmul.mubr.bf16.gmra.mrb[28].mxu1 %v1346_v41 }
  0x5e   :  { %1177 = vmatprep.mubr.msk.bf16.mxu0 %vm184_vm0, %v1349_v42  ;;  %1201 = vmatprep.mubr.msk.bf16.mxu1 %vm184_vm0, %v1352_v43 }
  0x65   :  { %676 = vmatmul.mubr.bf16.vlgmr.msra.gmra.mrb[32].mxu0 %v1347_v44  ;;  %885 = vmatmul.mubr.bf16.vlgmr.msra.gmra.mrb[32].mxu1 %v1350_v45 }
  0x66   :  { %1178 = vmatprep.mubr.msk.bf16.mxu0 %vm184_vm0, %v1353_v46  ;;  %1202 = vmatprep.mubr.msk.bf16.mxu1 %vm184_vm0, %v1355_v47 }
  0x6d   :  { %684 = vmatmul.mubr.bf16.gmra.mrb[36].mxu0 %v1357_v48  ;;  %893 = vmatmul.mubr.bf16.gmra.mrb[36].mxu1 %v1358_v49 }
  0x6e   :  { %1179 = vmatprep.mubr.msk.bf16.mxu0 %vm184_vm0, %v1359_v50  ;;  %1203 = vmatprep.mubr.msk.bf16.mxu1 %vm184_vm0, %v1361_v51 }
  0x75   :  { %692 = vmatmul.mubr.bf16.gmra.mrb[40].mxu0 %v1363_v52  ;;  %901 = vmatmul.mubr.bf16.gmra.mrb[40].mxu1 %v1364_v53 }
  0x76   :  { %1180 = vmatprep.mubr.msk.bf16.mxu0 %vm184_vm0, %v1365_v54  ;;  %1204 = vmatprep.mubr.msk.bf16.mxu1 %vm184_vm0, %v1367_v55 }
  0x7d   :  { %700 = vmatmul.mubr.bf16.gmra.mrb[44].mxu0 %v1369_v56  ;;  %909 = vmatmul.mubr.bf16.gmra.mrb[44].mxu1 %v1370_v57 }
  0x7e   :  { %1181 = vmatprep.mubr.msk.bf16.mxu0 %vm184_vm0, %v1371_v58  ;;  %1205 = vmatprep.mubr.msk.bf16.mxu1 %vm184_vm0, %v1373_v59 }
  0x85   :  { %708 = vmatmul.mubr.bf16.gmra.mrb[48].mxu0 %v1375_v60  ;;  %917 = vmatmul.mubr.bf16.gmra.mrb[48].mxu1 %v1376_v61 }
  0x86   :  { %1182 = vmatprep.mubr.msk.bf16.mxu0 %vm184_vm0, %v1377_v62  ;;  %1206 = vmatprep.mubr.msk.bf16.mxu1 %vm184_vm0, %v1379_v63 }
  0x8d   :  { %716 = vmatmul.mubr.bf16.gmra.mrb[52].mxu0 %v1381_v0  ;;  %925 = vmatmul.mubr.bf16.gmra.mrb[52].mxu1 %v1382_v1 }
  0x8e   :  { %1183 = vmatprep.mubr.msk.bf16.mxu0 %vm184_vm0, %v1383_v2  ;;  %1207 = vmatprep.mubr.msk.bf16.mxu1 %vm184_vm0, %v1385_v3 }
  0x95   :  { %724 = vmatmul.mubr.bf16.gmra.mrb[56].mxu0 %v1387_v4  ;;  %933 = vmatmul.mubr.bf16.gmra.mrb[56].mxu1 %v1388_v5 }
  0x96   :  { %1184 = vmatprep.mubr.msk.bf16.mxu0 %vm184_vm0, %v1389_v6  ;;  %1208 = vmatprep.mubr.msk.bf16.mxu1 %vm184_vm0, %v1391_v7 }
  0x9d   :  { %732 = vmatmul.mubr.bf16.gmra.mrb[60].mxu0 %v1393_v8  ;;  %941 = vmatmul.mubr.bf16.gmra.mrb[60].mxu1 %v1394_v9 }
  0xf8   :  { %v1766_v10 = vpop.f32.mrb[0].mxu0  ;;  %v1768_v11 = vpop.f32.mrb[0].mxu1 }
  0xf9   :  { %v515_v12 = vmax.f32 %v1766_v10, %v1768_v11  ;;  %v245_v13 = vpop.f32.mrb[1].mxu0  ;;  %v454_v14 = vpop.f32.mrb[1].mxu1 }
  0xfa   :  { %v1772_v15 = vpop.f32.mrb[2].mxu0  ;;  %v1774_v16 = vpop.f32.mrb[2].mxu1 }
  0xfb   :  { %v516_v17 = vmax.f32 %v1772_v15, %v1774_v16  ;;  %v248_v18 = vpop.f32.mrb[3].mxu0  ;;  %v457_v19 = vpop.f32.mrb[3].mxu1 }
 0x100   :  { %v1778_v20 = vpop.f32.mrb[4].mxu0  ;;  %v1780_v21 = vpop.f32.mrb[4].mxu1 }
 0x101   :  { %v517_v22 = vmax.f32 %v1778_v20, %v1780_v21  ;;  %v253_v23 = vpop.f32.mrb[5].mxu0  ;;  %v462_v24 = vpop.f32.mrb[5].mxu1 }
 0x102   :  { %v1784_v25 = vpop.f32.mrb[6].mxu0  ;;  %v1786_v26 = vpop.f32.mrb[6].mxu1 }
 0x103   :  { %v518_v27 = vmax.f32 %v1784_v25, %v1786_v26  ;;  %v256_v28 = vpop.f32.mrb[7].mxu0  ;;  %v465_v29 = vpop.f32.mrb[7].mxu1 }
 0x108   :  { %v1790_v30 = vpop.f32.mrb[8].mxu0  ;;  %v1792_v31 = vpop.f32.mrb[8].mxu1 }
 0x109   :  { %v519_v32 = vmax.f32 %v1790_v30, %v1792_v31  ;;  %v261_v33 = vpop.f32.mrb[9].mxu0  ;;  %v470_v34 = vpop.f32.mrb[9].mxu1 }
 0x10a   :  { %v1796_v35 = vpop.f32.mrb[10].mxu0  ;;  %v1798_v36 = vpop.f32.mrb[10].mxu1 }
 0x10b   :  { %v520_v37 = vmax.f32 %v1796_v35, %v1798_v36  ;;  %v264_v38 = vpop.f32.mrb[11].mxu0  ;;  %v473_v39 = vpop.f32.mrb[11].mxu1 }
 0x110   :  { %v1802_v40 = vpop.f32.mrb[12].mxu0  ;;  %v1804_v41 = vpop.f32.mrb[12].mxu1 }
 0x111   :  { %v521_v42 = vmax.f32 %v1802_v40, %v1804_v41  ;;  %v269_v43 = vpop.f32.mrb[13].mxu0  ;;  %v478_v44 = vpop.f32.mrb[13].mxu1 }
 0x112   :  { %v1808_v45 = vpop.f32.mrb[14].mxu0  ;;  %v1810_v46 = vpop.f32.mrb[14].mxu1 }
 0x113   :  { %v522_v47 = vmax.f32 %v1808_v45, %v1810_v46  ;;  %v272_v48 = vpop.f32.mrb[15].mxu0  ;;  %v481_v49 = vpop.f32.mrb[15].mxu1 }
 0x118   :  { %v1814_v50 = vpop.f32.mrb[16].mxu0  ;;  %v1816_v51 = vpop.f32.mrb[16].mxu1 }
 0x119   :  { %v523_v52 = vmax.f32 %v1814_v50, %v1816_v51  ;;  %v277_v53 = vpop.f32.mrb[17].mxu0  ;;  %v486_v54 = vpop.f32.mrb[17].mxu1 }
 0x11a   :  { %v1820_v55 = vpop.f32.mrb[18].mxu0  ;;  %v1822_v56 = vpop.f32.mrb[18].mxu1 }
 0x11b   :  { %v524_v57 = vmax.f32 %v1820_v55, %v1822_v56  ;;  %v280_v58 = vpop.f32.mrb[19].mxu0  ;;  %v489_v59 = vpop.f32.mrb[19].mxu1 }
 0x120   :  { %v1826_v60 = vpop.f32.mrb[20].mxu0  ;;  %v1828_v61 = vpop.f32.mrb[20].mxu1 }
 0x121   :  { %v525_v62 = vmax.f32 %v1826_v60, %v1828_v61  ;;  %v285_v63 = vpop.f32.mrb[21].mxu0  ;;  %v494_v0 = vpop.f32.mrb[21].mxu1 }
 0x122   :  { %v1832_v1 = vpop.f32.mrb[22].mxu0  ;;  %v1834_v2 = vpop.f32.mrb[22].mxu1  ;;  %v1865_v0 = vld [vmem:[%s1960_s5] ss:$0 sm:$0xff] }
 0x123   :  { %v526_v3 = vmax.f32 %v1832_v1, %v1834_v2  ;;  %v288_v4 = vpop.f32.mrb[23].mxu0  ;;  %v497_v5 = vpop.f32.mrb[23].mxu1 }
 0x128   :  { %v1838_v6 = vpop.f32.mrb[24].mxu0  ;;  %v1840_v7 = vpop.f32.mrb[24].mxu1 }
 0x129   :  { %v527_v8 = vmax.f32 %v1838_v6, %v1840_v7  ;;  %v293_v9 = vpop.f32.mrb[25].mxu0  ;;  %v502_v13 = vpop.f32.mrb[25].mxu1 }
 0x12a   :  { %v1844_v14 = vpop.f32.mrb[26].mxu0  ;;  %v1846_v18 = vpop.f32.mrb[26].mxu1 }
 0x12b   :  { %v528_v19 = vmax.f32 %v1844_v14, %v1846_v18  ;;  %v296_v23 = vpop.f32.mrb[27].mxu0  ;;  %v505_v24 = vpop.f32.mrb[27].mxu1 }
 0x130   :  { %v1850_v28 = vpop.f32.mrb[28].mxu0  ;;  %v1852_v29 = vpop.f32.mrb[28].mxu1 }
 0x131   :  { %v301_v34 = vpop.f32.mrb[29].mxu0  ;;  %v510_v38 = vpop.f32.mrb[29].mxu1 }
 0x132   :  { %v1856_v39 = vpop.f32.mrb[30].mxu0  ;;  %v1858_v43 = vpop.f32.mrb[30].mxu1 }
 0x133   :  { %v304_v48 = vpop.f32.mrb[31].mxu0  ;;  %v513_v49 = vpop.f32.mrb[31].mxu1 }
 0x138   :  { %v677_v53 = vpop.f32.mrb[32].mxu0  ;;  %v886_v54 = vpop.f32.mrb[32].mxu1 }
 0x139   :  { %v949_v58 = vmax.f32 %v677_v53, %v886_v54  ;;  %v679_v59 = vpop.f32.mrb[33].mxu0  ;;  %v888_v63 = vpop.f32.mrb[33].mxu1 }
 0x13a   :  { %v680_v4 = vpop.f32.mrb[34].mxu0  ;;  %v889_v5 = vpop.f32.mrb[34].mxu1 }
 0x13b   :  { %v965_v9 = vmax.f32 %v515_v12, %v949_v58  ;;  %v950_v13 = vmax.f32 %v680_v4, %v889_v5  ;;  %v682_v23 = vpop.f32.mrb[35].mxu0  ;;  %v891_v24 = vpop.f32.mrb[35].mxu1 }
 0x13d   :  { %v988_v34 = vadd.f32 %v1865_v0, %v965_v9  ;;  %v966_v38 = vmax.f32 %v516_v17, %v950_v13 }
 0x13f   :  { %v989_v48 = vadd.f32 %v1865_v0, %v966_v38  ;;  %v1004_v54 = vmax.f32 %v988_v34, 0.0 }
 0x140   :  { %v685_v49 = vpop.f32.mrb[36].mxu0  ;;  %v894_v53 = vpop.f32.mrb[36].mxu1 }
 0x141   :  { %v1005_v59 = vmax.f32 %v989_v48, 0.0  ;;  %v951_v63 = vmax.f32 %v685_v49, %v894_v53  ;;  %v687_v44 = vpop.f32.mrb[37].mxu0  ;;  %v896_v33 = vpop.f32.mrb[37].mxu1 }
 0x142   :  { %v688_v10 = vpop.f32.mrb[38].mxu0  ;;  %v897_v11 = vpop.f32.mrb[38].mxu1 }
 0x143   :  { %v1245_v12 = vpack.c.bf16 %v1005_v59, %v1004_v54  ;;  %v967_v58 = vmax.f32 %v517_v22, %v951_v63  ;;  %v952_v4 = vmax.f32 %v688_v10, %v897_v11  ;;  %v690_v5 = vpop.f32.mrb[39].mxu0  ;;  %v899_v15 = vpop.f32.mrb[39].mxu1 }
 0x145   :  { %1246 = vst [vmem:[%s1961_s6] sm:$0xff] %v1245_v12   ;;  %v990_v16 = vadd.f32 %v1865_v0, %v967_v58  ;;  %v968_v17 = vmax.f32 %v518_v27, %v952_v4 }
 0x147   :  { %v991_v33 = vadd.f32 %v1865_v0, %v968_v17  ;;  %v1006_v13 = vmax.f32 %v990_v16, 0.0 }
 0x148   :  { %v693_v44 = vpop.f32.mrb[40].mxu0  ;;  %v902_v9 = vpop.f32.mrb[40].mxu1 }
 0x149   :  { %v1007_v20 = vmax.f32 %v991_v33, 0.0  ;;  %v953_v21 = vmax.f32 %v693_v44, %v902_v9  ;;  %v695_v22 = vpop.f32.mrb[41].mxu0  ;;  %v904_v23 = vpop.f32.mrb[41].mxu1 }
 0x14a   :  { %v696_v24 = vpop.f32.mrb[42].mxu0  ;;  %v905_v34 = vpop.f32.mrb[42].mxu1 }
 0x14b   :  { %v1250_v38 = vpack.c.bf16 %v1007_v20, %v1006_v13  ;;  %v969_v48 = vmax.f32 %v519_v32, %v953_v21  ;;  %v954_v49 = vmax.f32 %v696_v24, %v905_v34  ;;  %v698_v53 = vpop.f32.mrb[43].mxu0  ;;  %v907_v25 = vpop.f32.mrb[43].mxu1 }
 0x14d   :  { %1282 = vst [vmem:[%s1961_s6 + $0x8] sm:$0xff] %v1250_v38   ;;  %v992_v26 = vadd.f32 %v1865_v0, %v969_v48  ;;  %v970_v27 = vmax.f32 %v520_v37, %v954_v49 }
 0x14f   :  { %v993_v54 = vadd.f32 %v1865_v0, %v970_v27  ;;  %v1008_v10 = vmax.f32 %v992_v26, 0.0 }
 0x150   :  { %v701_v59 = vpop.f32.mrb[44].mxu0  ;;  %v910_v63 = vpop.f32.mrb[44].mxu1 }
 0x151   :  { %v1009_v30 = vmax.f32 %v993_v54, 0.0  ;;  %v955_v31 = vmax.f32 %v701_v59, %v910_v63  ;;  %v703_v32 = vpop.f32.mrb[45].mxu0  ;;  %v912_v11 = vpop.f32.mrb[45].mxu1 }
 0x152   :  { %v704_v12 = vpop.f32.mrb[46].mxu0  ;;  %v913_v58 = vpop.f32.mrb[46].mxu1 }
 0x153   :  { %v1255_v4 = vpack.c.bf16 %v1009_v30, %v1008_v10  ;;  %v971_v5 = vmax.f32 %v521_v42, %v955_v31  ;;  %v956_v15 = vmax.f32 %v704_v12, %v913_v58  ;;  %v706_v16 = vpop.f32.mrb[47].mxu0  ;;  %v915_v35 = vpop.f32.mrb[47].mxu1 }
 0x155   :  { %1283 = vst [vmem:[%s1961_s6 + $0x10] sm:$0xff] %v1255_v4   ;;  %v994_v36 = vadd.f32 %v1865_v0, %v971_v5  ;;  %v972_v37 = vmax.f32 %v522_v47, %v956_v15 }
 0x157   :  { %v995_v17 = vadd.f32 %v1865_v0, %v972_v37  ;;  %v1010_v9 = vmax.f32 %v994_v36, 0.0 }
 0x158   :  { %v709_v33 = vpop.f32.mrb[48].mxu0  ;;  %v918_v44 = vpop.f32.mrb[48].mxu1 }
 0x159   :  { %v1011_v40 = vmax.f32 %v995_v17, 0.0  ;;  %v957_v41 = vmax.f32 %v709_v33, %v918_v44  ;;  %v711_v42 = vpop.f32.mrb[49].mxu0  ;;  %v920_v13 = vpop.f32.mrb[49].mxu1 }
 0x15a   :  { %v712_v20 = vpop.f32.mrb[50].mxu0  ;;  %v921_v21 = vpop.f32.mrb[50].mxu1  ;;  %v1962_v42 = vmax.f32 %v1850_v28, %v1852_v29 }
 0x15b   :  { %v1260_v22 = vpack.c.bf16 %v1011_v40, %v1010_v9  ;;  %v973_v23 = vmax.f32 %v523_v52, %v957_v41  ;;  %v958_v24 = vmax.f32 %v712_v20, %v921_v21  ;;  %v714_v34 = vpop.f32.mrb[51].mxu0  ;;  %v923_v45 = vpop.f32.mrb[51].mxu1 }
 0x15d   :  { %1284 = vst [vmem:[%s1961_s6 + $0x18] sm:$0xff] %v1260_v22   ;;  %v996_v46 = vadd.f32 %v1865_v0, %v973_v23  ;;  %v974_v47 = vmax.f32 %v524_v57, %v958_v24 }
 0x15f   :  { %v997_v38 = vadd.f32 %v1865_v0, %v974_v47  ;;  %v1012_v53 = vmax.f32 %v996_v46, 0.0 }
 0x160   :  { %v717_v48 = vpop.f32.mrb[52].mxu0  ;;  %v926_v49 = vpop.f32.mrb[52].mxu1 }
 0x161   :  { %v1013_v50 = vmax.f32 %v997_v38, 0.0  ;;  %v959_v51 = vmax.f32 %v717_v48, %v926_v49  ;;  %v719_v52 = vpop.f32.mrb[53].mxu0  ;;  %v928_v25 = vpop.f32.mrb[53].mxu1 }
 0x162   :  { %v720_v26 = vpop.f32.mrb[54].mxu0  ;;  %v929_v27 = vpop.f32.mrb[54].mxu1 }
 0x163   :  { %v1265_v54 = vpack.c.bf16 %v1013_v50, %v1012_v53  ;;  %v975_v59 = vmax.f32 %v525_v62, %v959_v51  ;;  %v960_v63 = vmax.f32 %v720_v26, %v929_v27  ;;  %v722_v10 = vpop.f32.mrb[55].mxu0  ;;  %v931_v55 = vpop.f32.mrb[55].mxu1 }
 0x165   :  { %1285 = vst [vmem:[%s1961_s6 + $0x20] sm:$0xff] %v1265_v54   ;;  %v998_v56 = vadd.f32 %v1865_v0, %v975_v59  ;;  %v976_v57 = vmax.f32 %v526_v3, %v960_v63 }
 0x167   :  { %v999_v30 = vadd.f32 %v1865_v0, %v976_v57  ;;  %v1014_v11 = vmax.f32 %v998_v56, 0.0 }
 0x168   :  { %v725_v31 = vpop.f32.mrb[56].mxu0  ;;  %v934_v32 = vpop.f32.mrb[56].mxu1 }
 0x169   :  { %v1015_v60 = vmax.f32 %v999_v30, 0.0  ;;  %v961_v61 = vmax.f32 %v725_v31, %v934_v32  ;;  %v727_v62 = vpop.f32.mrb[57].mxu0  ;;  %v936_v12 = vpop.f32.mrb[57].mxu1 }
 0x16a   :  { %v728_v58 = vpop.f32.mrb[58].mxu0  ;;  %v937_v4 = vpop.f32.mrb[58].mxu1 }
 0x16b   :  { %v1270_v5 = vpack.c.bf16 %v1015_v60, %v1014_v11  ;;  %v977_v15 = vmax.f32 %v527_v8, %v961_v61  ;;  %v962_v16 = vmax.f32 %v728_v58, %v937_v4  ;;  %v730_v35 = vpop.f32.mrb[59].mxu0  ;;  %v939_v1 = vpop.f32.mrb[59].mxu1 }
 0x16d   :  { %1286 = vst [vmem:[%s1961_s6 + $0x28] sm:$0xff] %v1270_v5   ;;  %v1000_v2 = vadd.f32 %v1865_v0, %v977_v15  ;;  %v978_v3 = vmax.f32 %v528_v19, %v962_v16  ;;  %v1963_v19 = vmax.f32 %v1856_v39, %v1858_v43 }
 0x16f   :  { %v1001_v36 = vadd.f32 %v1865_v0, %v978_v3  ;;  %v1016_v33 = vmax.f32 %v1000_v2, 0.0 }
 0x170   :  { %v733_v37 = vpop.f32.mrb[60].mxu0  ;;  %v942_v17 = vpop.f32.mrb[60].mxu1 }
 0x171   :  { %v1017_v6 = vmax.f32 %v1001_v36, 0.0  ;;  %v963_v7 = vmax.f32 %v733_v37, %v942_v17  ;;  %v735_v8 = vpop.f32.mrb[61].mxu0  ;;  %v944_v44 = vpop.f32.mrb[61].mxu1 }
 0x172   :  { %v736_v9 = vpop.f32.mrb[62].mxu0  ;;  %v945_v40 = vpop.f32.mrb[62].mxu1 }
 0x173   :  { %v1275_v41 = vpack.c.bf16 %v1017_v6, %v1016_v33  ;;  %v979_v13 = vmax.f32 %v1962_v42, %v963_v7  ;;  %v964_v20 = vmax.f32 %v736_v9, %v945_v40  ;;  %v738_v21 = vpop.f32.mrb[63].mxu0  ;;  %v947_v14 = vpop.f32.mrb[63].mxu1 }
 0x175   :  { %1287 = vst [vmem:[%s1961_s6 + $0x30] sm:$0xff] %v1275_v41   ;;  %v1002_v18 = vadd.f32 %v1865_v0, %v979_v13  ;;  %v980_v22 = vmax.f32 %v1963_v19, %v964_v20 }
 0x177   :  { %v1003_v23 = vadd.f32 %v1865_v0, %v980_v22  ;;  %v1018_v24 = vmax.f32 %v1002_v18, 0.0 }
 0x179   :  { %v1019_v34 = vmax.f32 %v1003_v23, 0.0 }
 0x17b   :  { %v1280_v45 = vpack.c.bf16 %v1019_v34, %v1018_v24 }
 0x17d   :  { %1288 = vst [vmem:[%s1961_s6 + $0x38] sm:$0xff] %v1280_v45  }

// kernel: cae_forward.6
= control target key start
LH: loop header
LB: loop body
LE: loop exit
PB: predicated region body
PF: predicated region fallthrough
CT: control target
= control target key end

     0   :  { %s1076_s12 = smov 0   ;;  %s1078_s13 = smov 0   ;;  %s1183_s0 = inlined_call_operand.vmem [shape: bf16[4,128,256], index: 0, kind: input, shape index: {}]   ;;  %s1184_s1 = inlined_call_operand.vmem [shape: bf16[4,256,128], index: 1, kind: input, shape index: {}]   ;;  %s1185_s2 = inlined_call_operand.vmem [shape: f32[1,128], index: 2, kind: input, shape index: {}]   ;;  %s1186_s3 = inlined_call_operand.vmem [shape: bf16[4,128,128], index: 3, kind: output, shape index: {}]  }
   0x1   :  { %s1080_s14 = smov 0  }
   0x2 LB: > { %s25_s15 = sadd.s32 1, %s1050_s13  ;;  %p764_p0 = scmp.ge.s32.totalorder %s1054_s14, 1  ;;  %s1054_s14 = sphi %s1080_s14, %s13_s14   ;;  %s1050_s13 = sphi %s1078_s13, %s1188_s13   ;;  %s1046_s12 = sphi %s1076_s12, %s1187_s12  }
   0x3   : > { %p27_p1 = scmp.ge.s32.totalorder %s25_s15, 4  ;;  %p169_p2 = scmp.lt.s32.totalorder %s1054_s14, 5 }
   0x5   : > { %s1190_s15 = smov (%p27_p1, %s25_s15), 0  ;;  %p170_p3 = pnand %p764_p0, %p169_p2 }
   0x6   : > { %p208_p4 = scmp.lt.s32.totalorder (!%p170_p3), %s1046_s12, 3  ;;  %v1142_v34 = vld [vmem:[%s1185_s2] ss:$0 sm:$0xff] (!%p170_p3) }
   0x7   : > { %173 = sbr.rel (%p170_p3) target bundleno = 299 (0x12b), region = 32 }
   0xe   : > { %s1192_s12 = smov (!%p208_p4, %s1046_s12), 3 }
   0xf   : > { %s822_s16 = sshll.u32 %s1192_s12, 7  ;;  %s824_s25 = sshll.u32 %s1192_s12, 6 }
  0x10   : > { %s1100_s19 = scalar_lea.vmem %s1184_s1, %s822_s16  ;;  %s1114_s22 = scalar_lea.vmem %s1183_s0, %s822_s16 }
  0x11   : > { %v992_v0 = vld [vmem:[%s1100_s19 + $0x40] sm:$0xff]   ;;  %v994_v2 = vld [vmem:[%s1100_s19 + $0x48] sm:$0xff]   ;;  %v996_v4 = vld [vmem:[%s1100_s19 + $0x50] sm:$0xff]   ;;  %s1152_s28 = scalar_lea.vmem %s1186_s3, %s824_s25 }
  0x12   : > { %v993_v1 = vld [vmem:[%s1100_s19] sm:$0xff]   ;;  %888 = vmatprep.subr.bf16.mxu0 %v992_v0  ;;  %952 = vmatprep.subr.bf16.mxu1 %v992_v0  ;;  %v995_v3 = vld [vmem:[%s1100_s19 + $0x8] sm:$0xff]   ;;  %v997_v5 = vld [vmem:[%s1100_s19 + $0x10] sm:$0xff]  }
  0x13   : > { %889 = vmatpush3.bf16.msra.mxu0 %v993_v1  ;;  %960 = vmatpush3.bf16.msra.mxu1 %v993_v1  ;;  %v998_v6 = vld [vmem:[%s1100_s19 + $0x58] sm:$0xff]   ;;  %v1000_v8 = vld [vmem:[%s1100_s19 + $0x60] sm:$0xff]   ;;  %v1002_v10 = vld [vmem:[%s1100_s19 + $0x68] sm:$0xff]  }
  0x14   : > { %890 = vmatprep.subr.bf16.mxu0 %v994_v2  ;;  %953 = vmatprep.subr.bf16.mxu1 %v994_v2  ;;  %v999_v7 = vld [vmem:[%s1100_s19 + $0x18] sm:$0xff]   ;;  %v1001_v9 = vld [vmem:[%s1100_s19 + $0x20] sm:$0xff]   ;;  %v1003_v13 = vld [vmem:[%s1100_s19 + $0x28] sm:$0xff]  }
  0x15   : > { %v1010_v11 = vld [vmem:[%s1114_s22 + $0x4] ss:$8 sps:$4 sm:$0xff]   ;;  %v1004_v14 = vld [vmem:[%s1100_s19 + $0x70] sm:$0xff]   ;;  %v1006_v16 = vld [vmem:[%s1100_s19 + $0x78] sm:$0xff]  }
  0x16   : > { %v1013_v12 = vld [vmem:[%s1114_s22 + $0x44] ss:$8 sps:$4 sm:$0xff]   ;;  %497 = vmatprep.mubr.bf16.mxu0 %v1010_v11  ;;  %v1005_v15 = vld [vmem:[%s1100_s19 + $0x30] sm:$0xff]   ;;  %v1007_v17 = vld [vmem:[%s1100_s19 + $0x38] sm:$0xff]  }
  0x17   : > { %891 = vmatpush3.bf16.msra.mxu0 %v995_v3  ;;  %961 = vmatpush3.bf16.msra.mxu1 %v995_v3  ;;  %v1008_v18 = vld [vmem:[%s1114_s22] ss:$8 sps:$4 sm:$0xff]   ;;  %v1014_v20 = vld [vmem:[%s1114_s22 + $0x14] ss:$8 sps:$4 sm:$0xff]   ;;  %v1018_v22 = vld [vmem:[%s1114_s22 + $0x10] ss:$8 sps:$4 sm:$0xff]  }
  0x18   : > { %892 = vmatprep.subr.bf16.mxu0 %v996_v4  ;;  %954 = vmatprep.subr.bf16.mxu1 %v996_v4  ;;  %v1011_v19 = vld [vmem:[%s1114_s22 + $0x40] ss:$8 sps:$4 sm:$0xff]   ;;  %v1016_v21 = vld [vmem:[%s1114_s22 + $0x54] ss:$8 sps:$4 sm:$0xff]   ;;  %v1019_v23 = vld [vmem:[%s1114_s22 + $0x50] ss:$8 sps:$4 sm:$0xff]  }
  0x19   : > { %529 = vmatprep.mubr.bf16.mxu1 %v1013_v12  ;;  %v1020_v24 = vld [vmem:[%s1114_s22 + $0x24] ss:$8 sps:$4 sm:$0xff]   ;;  %v1024_v26 = vld [vmem:[%s1114_s22 + $0x20] ss:$8 sps:$4 sm:$0xff]   ;;  %v1026_v28 = vld [vmem:[%s1114_s22 + $0x34] ss:$8 sps:$4 sm:$0xff]  }
  0x1a   : > { %v1022_v25 = vld [vmem:[%s1114_s22 + $0x64] ss:$8 sps:$4 sm:$0xff]   ;;  %v1025_v27 = vld [vmem:[%s1114_s22 + $0x60] ss:$8 sps:$4 sm:$0xff]   ;;  %v1028_v29 = vld [vmem:[%s1114_s22 + $0x74] ss:$8 sps:$4 sm:$0xff]  }
  0x1b   : > { %893 = vmatpush3.bf16.msra.mxu0 %v997_v5  ;;  %962 = vmatpush3.bf16.msra.mxu1 %v997_v5  ;;  %v1030_v30 = vld [vmem:[%s1114_s22 + $0x30] ss:$8 sps:$4 sm:$0xff]  }
  0x1c   : > { %894 = vmatprep.subr.bf16.mxu0 %v998_v6  ;;  %955 = vmatprep.subr.bf16.mxu1 %v998_v6  ;;  %v1031_v31 = vld [vmem:[%s1114_s22 + $0x70] ss:$8 sps:$4 sm:$0xff]  }
  0x1f   : > { %895 = vmatpush3.bf16.msra.mxu0 %v999_v7  ;;  %963 = vmatpush3.bf16.msra.mxu1 %v999_v7 }
  0x20   : > { %896 = vmatprep.subr.bf16.mxu0 %v1000_v8  ;;  %956 = vmatprep.subr.bf16.mxu1 %v1000_v8 }
  0x23   : > { %897 = vmatpush3.bf16.msra.mxu0 %v1001_v9  ;;  %964 = vmatpush3.bf16.msra.mxu1 %v1001_v9 }
  0x24   : > { %898 = vmatprep.subr.bf16.mxu0 %v1002_v10  ;;  %957 = vmatprep.subr.bf16.mxu1 %v1002_v10 }
  0x27   : > { %899 = vmatpush3.bf16.msra.mxu0 %v1003_v13  ;;  %965 = vmatpush3.bf16.msra.mxu1 %v1003_v13 }
  0x28   : > { %900 = vmatprep.subr.bf16.mxu0 %v1004_v14  ;;  %958 = vmatprep.subr.bf16.mxu1 %v1004_v14 }
  0x2b   : > { %901 = vmatpush3.bf16.msra.mxu0 %v1005_v15  ;;  %966 = vmatpush3.bf16.msra.mxu1 %v1005_v15 }
  0x2c   : > { %902 = vmatprep.subr.bf16.mxu0 %v1006_v16  ;;  %959 = vmatprep.subr.bf16.mxu1 %v1006_v16 }
  0x2f   : > { %903 = vmatpush3.bf16.msra.mxu0 %v1007_v17  ;;  %967 = vmatpush3.bf16.msra.mxu1 %v1007_v17 }
  0x32   : > { %498 = vmatmul.mubr.bf16.vlgmr.msra.gmra.mrb[0].mxu0 %v1008_v18  ;;  %530 = vmatmul.mubr.bf16.vlgmr.msra.gmra.mrb[0].mxu1 %v1011_v19 }
  0x33   : > { %505 = vmatprep.mubr.bf16.mxu0 %v1014_v20  ;;  %537 = vmatprep.mubr.bf16.mxu1 %v1016_v21 }
  0x3a   : > { %506 = vmatmul.mubr.bf16.gmra.mrb[4].mxu0 %v1018_v22  ;;  %538 = vmatmul.mubr.bf16.gmra.mrb[4].mxu1 %v1019_v23 }
  0x3b   : > { %513 = vmatprep.mubr.bf16.mxu0 %v1020_v24  ;;  %545 = vmatprep.mubr.bf16.mxu1 %v1022_v25 }
  0x42   : > { %514 = vmatmul.mubr.bf16.gmra.mrb[8].mxu0 %v1024_v26  ;;  %546 = vmatmul.mubr.bf16.gmra.mrb[8].mxu1 %v1025_v27 }
  0x43   : > { %521 = vmatprep.mubr.bf16.mxu0 %v1026_v28  ;;  %553 = vmatprep.mubr.bf16.mxu1 %v1028_v29 }
  0x4a   : > { %522 = vmatmul.mubr.bf16.gmra.mrb[12].mxu0 %v1030_v30  ;;  %554 = vmatmul.mubr.bf16.gmra.mrb[12].mxu1 %v1031_v31 }
 0x105   : > { %v904_v32 = vpop.f32.mrb[0].mxu0  ;;  %v928_v33 = vpop.f32.mrb[0].mxu1 }
 0x106   : > { %v905_v35 = vpop.f32.mrb[1].mxu0  ;;  %v929_v36 = vpop.f32.mrb[1].mxu1 }
 0x107   : > { %v906_v37 = vadd.f32 %v905_v35, %v904_v32  ;;  %v930_v38 = vadd.f32 %v929_v36, %v928_v33  ;;  %v907_v39 = vpop.f32.mrb[2].mxu0  ;;  %v931_v40 = vpop.f32.mrb[2].mxu1 }
 0x108   : > { %v908_v41 = vpop.f32.mrb[3].mxu0  ;;  %v932_v42 = vpop.f32.mrb[3].mxu1 }
 0x109   : > { %v500_v43 = vadd.f32 %v906_v37, %v1142_v34  ;;  %v532_v44 = vadd.f32 %v930_v38, %v1142_v34  ;;  %v909_v45 = vadd.f32 %v908_v41, %v907_v39  ;;  %v933_v46 = vadd.f32 %v932_v42, %v931_v40 }
 0x10b   : > { %v503_v47 = vadd.f32 %v909_v45, %v1142_v34  ;;  %v535_v48 = vadd.f32 %v933_v46, %v1142_v34  ;;  %v562_v49 = vmax.f32 %v500_v43, 0.0  ;;  %v570_v50 = vmax.f32 %v532_v44, 0.0 }
 0x10d   : > { %v563_v51 = vmax.f32 %v503_v47, 0.0  ;;  %v571_v52 = vmax.f32 %v535_v48, 0.0  ;;  %v910_v53 = vpop.f32.mrb[4].mxu0  ;;  %v934_v54 = vpop.f32.mrb[4].mxu1 }
 0x10e   : > { %v911_v55 = vpop.f32.mrb[5].mxu0  ;;  %v935_v56 = vpop.f32.mrb[5].mxu1 }
 0x10f   : > { %v844_v57 = vpack.c.bf16 %v563_v51, %v562_v49  ;;  %v864_v58 = vpack.c.bf16 %v571_v52, %v570_v50  ;;  %v912_v59 = vadd.f32 %v911_v55, %v910_v53  ;;  %v936_v60 = vadd.f32 %v935_v56, %v934_v54  ;;  %v913_v61 = vpop.f32.mrb[6].mxu0  ;;  %v937_v62 = vpop.f32.mrb[6].mxu1 }
 0x110   : > { %v914_v63 = vpop.f32.mrb[7].mxu0  ;;  %v938_v0 = vpop.f32.mrb[7].mxu1 }
 0x111   : > { %845 = vst [vmem:[%s1152_s28] sm:$0xff] %v844_v57   ;;  %884 = vst [vmem:[%s1152_s28 + $0x20] sm:$0xff] %v864_v58   ;;  %v508_v1 = vadd.f32 %v912_v59, %v1142_v34  ;;  %v540_v2 = vadd.f32 %v936_v60, %v1142_v34  ;;  %v915_v3 = vadd.f32 %v914_v63, %v913_v61 }
 0x112   : > { %v939_v4 = vadd.f32 %v938_v0, %v937_v62 }
 0x113   : > { %v511_v5 = vadd.f32 %v915_v3, %v1142_v34  ;;  %v564_v7 = vmax.f32 %v508_v1, 0.0  ;;  %v572_v8 = vmax.f32 %v540_v2, 0.0 }
 0x114   : > { %v543_v6 = vadd.f32 %v939_v4, %v1142_v34 }
 0x115   : > { %v565_v9 = vmax.f32 %v511_v5, 0.0  ;;  %v916_v11 = vpop.f32.mrb[8].mxu0  ;;  %v940_v12 = vpop.f32.mrb[8].mxu1 }
 0x116   : > { %v573_v10 = vmax.f32 %v543_v6, 0.0  ;;  %v917_v13 = vpop.f32.mrb[9].mxu0  ;;  %v941_v14 = vpop.f32.mrb[9].mxu1 }
 0x117   : > { %v849_v15 = vpack.c.bf16 %v565_v9, %v564_v7  ;;  %v918_v17 = vadd.f32 %v917_v13, %v916_v11  ;;  %v942_v18 = vadd.f32 %v941_v14, %v940_v12  ;;  %v919_v19 = vpop.f32.mrb[10].mxu0  ;;  %v943_v20 = vpop.f32.mrb[10].mxu1 }
 0x118   : > { %v869_v16 = vpack.c.bf16 %v573_v10, %v572_v8  ;;  %v920_v21 = vpop.f32.mrb[11].mxu0  ;;  %v944_v22 = vpop.f32.mrb[11].mxu1 }
 0x119   : > { %881 = vst [vmem:[%s1152_s28 + $0x8] sm:$0xff] %v849_v15   ;;  %v516_v23 = vadd.f32 %v918_v17, %v1142_v34  ;;  %v548_v24 = vadd.f32 %v942_v18, %v1142_v34  ;;  %v921_v25 = vadd.f32 %v920_v21, %v919_v19  ;;  %v945_v26 = vadd.f32 %v944_v22, %v943_v20 }
 0x11a   : > { %885 = vst [vmem:[%s1152_s28 + $0x28] sm:$0xff] %v869_v16  }
 0x11b   : > { %v519_v27 = vadd.f32 %v921_v25, %v1142_v34  ;;  %v551_v28 = vadd.f32 %v945_v26, %v1142_v34  ;;  %v566_v29 = vmax.f32 %v516_v23, 0.0  ;;  %v574_v30 = vmax.f32 %v548_v24, 0.0 }
 0x11d   : > { %v567_v31 = vmax.f32 %v519_v27, 0.0  ;;  %v575_v32 = vmax.f32 %v551_v28, 0.0  ;;  %v922_v33 = vpop.f32.mrb[12].mxu0  ;;  %v946_v35 = vpop.f32.mrb[12].mxu1 }
 0x11e   : > { %v923_v36 = vpop.f32.mrb[13].mxu0  ;;  %v947_v37 = vpop.f32.mrb[13].mxu1 }
 0x11f   : > { %v854_v38 = vpack.c.bf16 %v567_v31, %v566_v29  ;;  %v874_v39 = vpack.c.bf16 %v575_v32, %v574_v30  ;;  %v924_v40 = vadd.f32 %v923_v36, %v922_v33  ;;  %v948_v41 = vadd.f32 %v947_v37, %v946_v35  ;;  %v925_v42 = vpop.f32.mrb[14].mxu0  ;;  %v949_v43 = vpop.f32.mrb[14].mxu1 }
 0x120   : > { %v926_v44 = vpop.f32.mrb[15].mxu0  ;;  %v950_v45 = vpop.f32.mrb[15].mxu1 }
 0x121   : > { %882 = vst [vmem:[%s1152_s28 + $0x10] sm:$0xff] %v854_v38   ;;  %886 = vst [vmem:[%s1152_s28 + $0x30] sm:$0xff] %v874_v39   ;;  %v524_v46 = vadd.f32 %v924_v40, %v1142_v34  ;;  %v556_v47 = vadd.f32 %v948_v41, %v1142_v34  ;;  %v927_v48 = vadd.f32 %v926_v44, %v925_v42 }
 0x122   : > { %v951_v49 = vadd.f32 %v950_v45, %v949_v43 }
 0x123   : > { %v527_v50 = vadd.f32 %v927_v48, %v1142_v34  ;;  %v568_v52 = vmax.f32 %v524_v46, 0.0  ;;  %v576_v53 = vmax.f32 %v556_v47, 0.0 }
 0x124   : > { %v559_v51 = vadd.f32 %v951_v49, %v1142_v34 }
 0x125   : > { %v569_v54 = vmax.f32 %v527_v50, 0.0 }
 0x126   : > { %v577_v55 = vmax.f32 %v559_v51, 0.0 }
 0x127   : > { %v859_v56 = vpack.c.bf16 %v569_v54, %v568_v52 }
 0x128   : > { %v879_v57 = vpack.c.bf16 %v577_v55, %v576_v53 }
 0x129   : > { %883 = vst [vmem:[%s1152_s28 + $0x18] sm:$0xff] %v859_v56  }
 0x12a   : > { %887 = vst [vmem:[%s1152_s28 + $0x38] sm:$0xff] %v879_v57  }
 0x12b PF: > { %s13_s14 = sadd.s32 1, %s1054_s14   ;;  %s1187_s12 = smov %s1050_s13 }
 0x12c   : > { %p10_p5 = scmp.ge.s32.totalorder %s13_s14, 6   ;;  %s1188_s13 = smov %s1190_s15 }
 0x12e   :  { %12 = sbr.rel (!%p10_p5) target bundleno = 2 (0x2), region = 65 }

// kernel: cae_forward.7
= control target key start
LH: loop header
LB: loop body
LE: loop exit
PB: predicated region body
PF: predicated region fallthrough
CT: control target
= control target key end

     0   :  { %s900_s12 = smov 0   ;;  %s902_s13 = smov 0   ;;  %s998_s0 = inlined_call_operand.vmem [shape: bf16[4,128,64], index: 0, kind: input, shape index: {}]   ;;  %s999_s1 = inlined_call_operand.vmem [shape: bf16[4,64,128], index: 1, kind: input, shape index: {}]   ;;  %s1000_s2 = inlined_call_operand.vmem [shape: f32[1,128], index: 2, kind: input, shape index: {}]   ;;  %s1001_s3 = inlined_call_operand.vmem [shape: f32[4,128,128], index: 3, kind: output, shape index: {}]  }
   0x1   :  { %s904_s14 = smov 0  }
   0x2 LB: > { %s25_s15 = sadd.s32 1, %s874_s13  ;;  %p663_p0 = scmp.ge.s32.totalorder %s878_s14, 1  ;;  %s878_s14 = sphi %s904_s14, %s13_s14   ;;  %s874_s13 = sphi %s902_s13, %s1003_s13   ;;  %s870_s12 = sphi %s900_s12, %s1002_s12  }
   0x3   : > { %p27_p1 = scmp.ge.s32.totalorder %s25_s15, 4  ;;  %p168_p2 = scmp.lt.s32.totalorder %s878_s14, 5 }
   0x5   : > { %s1005_s15 = smov (%p27_p1, %s25_s15), 0  ;;  %p169_p3 = pnand %p663_p0, %p168_p2 }
   0x6   : > { %p206_p4 = scmp.lt.s32.totalorder (!%p169_p3), %s870_s12, 3  ;;  %vm326_vm0 = vcmask (!%p169_p3), 523264   ;;  %v949_v12 = vld [vmem:[%s1000_s2] ss:$0 sm:$0xff] (!%p169_p3) }
   0x7   : > { %172 = sbr.rel (%p169_p3) target bundleno = 303 (0x12f), region = 32 }
   0xe   : > { %s1007_s12 = smov (!%p206_p4, %s870_s12), 3 }
   0xf   : > { %s709_s16 = sshll.u32 %s1007_s12, 6  ;;  %s710_s17 = sshll.u32 %s1007_s12, 5 }
  0x10   : > { %s219_s20 = scalar_lea.vmem %s999_s1, %s710_s17  ;;  %s928_s23 = scalar_lea.vmem %s998_s0, %s709_s16 }
  0x11   : > { %v780_v0 = vld [vmem:[%s219_s20] sm:$0xff]   ;;  %v781_v1 = vld [vmem:[%s219_s20 + $0x8] sm:$0xff]   ;;  %v782_v2 = vld [vmem:[%s219_s20 + $0x10] sm:$0xff]   ;;  %s711_s26 = sshll.u32 %s1007_s12, 7 }
  0x12   : > { %724 = vmatprep.subr.bf16.mxu0 %v780_v0  ;;  %748 = vmatprep.subr.bf16.mxu1 %v780_v0  ;;  %v784_v3 = vld [vmem:[%s928_s23] sm:$0xff]   ;;  %v783_v5 = vld [vmem:[%s219_s20 + $0x18] sm:$0xff]   ;;  %v786_v6 = vld [vmem:[%s928_s23 + $0x8] sm:$0xff]   ;;  %s971_s29 = scalar_lea.vmem %s1001_s3, %s711_s26 }
  0x13   : > { %725 = vmatpush3.bf16.msra.mxu0 %v780_v0  ;;  %752 = vmatpush3.bf16.msra.mxu1 %v780_v0  ;;  %v785_v4 = vld [vmem:[%s928_s23 + $0x20] sm:$0xff]   ;;  %v787_v7 = vld [vmem:[%s928_s23 + $0x28] sm:$0xff]   ;;  %v788_v8 = vld [vmem:[%s928_s23 + $0x10] sm:$0xff]  }
  0x14   : > { %726 = vmatprep.subr.bf16.mxu0 %v781_v1  ;;  %749 = vmatprep.subr.bf16.mxu1 %v781_v1  ;;  %v789_v9 = vld [vmem:[%s928_s23 + $0x30] sm:$0xff]   ;;  %v790_v10 = vld [vmem:[%s928_s23 + $0x18] sm:$0xff]  }
  0x15   : > { %732 = vmatprep.mubr.msk.bf16.mxu0 %vm326_vm0, %v784_v3  ;;  %740 = vmatprep.mubr.msk.bf16.mxu1 %vm326_vm0, %v785_v4  ;;  %v791_v11 = vld [vmem:[%s928_s23 + $0x38] sm:$0xff]  }
  0x17   : > { %727 = vmatpush3.bf16.msra.mxu0 %v781_v1  ;;  %753 = vmatpush3.bf16.msra.mxu1 %v781_v1 }
  0x18   : > { %728 = vmatprep.subr.bf16.mxu0 %v782_v2  ;;  %750 = vmatprep.subr.bf16.mxu1 %v782_v2 }
  0x1b   : > { %729 = vmatpush3.bf16.msra.mxu0 %v782_v2  ;;  %754 = vmatpush3.bf16.msra.mxu1 %v782_v2 }
  0x1c   : > { %730 = vmatprep.subr.bf16.mxu0 %v783_v5  ;;  %751 = vmatprep.subr.bf16.mxu1 %v783_v5 }
  0x1f   : > { %731 = vmatpush3.bf16.msra.mxu0 %v783_v5  ;;  %755 = vmatpush3.bf16.msra.mxu1 %v783_v5 }
  0x22   : > { %733 = vmatmul.mubr.msk.bf16.vlgmr.msra.gmra.mrb[0].mxu0 %vm326_vm0, %v786_v6  ;;  %741 = vmatmul.mubr.msk.bf16.vlgmr.msra.gmra.mrb[0].mxu1 %vm326_vm0, %v787_v7 }
  0x23   : > { %736 = vmatprep.mubr.msk.bf16.mxu0 %vm326_vm0, %v788_v8  ;;  %744 = vmatprep.mubr.msk.bf16.mxu1 %vm326_vm0, %v789_v9 }
  0x2a   : > { %737 = vmatmul.mubr.msk.bf16.gmra.mrb[4].mxu0 %vm326_vm0, %v790_v10  ;;  %745 = vmatmul.mubr.msk.bf16.gmra.mrb[4].mxu1 %vm326_vm0, %v791_v11 }
  0xf5   : > { %v734_v13 = vpop.f32.mrb[0].mxu0  ;;  %v742_v14 = vpop.f32.mrb[0].mxu1 }
  0xf6   : > { %v394_v15 = vadd.f32 %v734_v13, %v949_v12  ;;  %v426_v16 = vadd.f32 %v742_v14, %v949_v12  ;;  %v385_v17 = vpop.f32.mrb[1].mxu0  ;;  %v417_v18 = vpop.f32.mrb[1].mxu1 }
  0xf7   : > { %v386_v19 = vadd.f32 %v949_v12, %v385_v17  ;;  %v418_v20 = vadd.f32 %v949_v12, %v417_v18  ;;  %v735_v21 = vpop.f32.mrb[2].mxu0  ;;  %v743_v22 = vpop.f32.mrb[2].mxu1 }
  0xf8   : > { %v693_v23 = vmul.f32 -1.442695, %v394_v15  ;;  %v701_v24 = vmul.f32 -1.442695, %v426_v16  ;;  %v397_v25 = vadd.f32 %v735_v21, %v949_v12  ;;  %v429_v26 = vadd.f32 %v743_v22, %v949_v12  ;;  %v388_v27 = vpop.f32.mrb[3].mxu0  ;;  %v420_v28 = vpop.f32.mrb[3].mxu1 }
  0xf9   : > { %v691_v29 = vmul.f32 -1.442695, %v386_v19  ;;  %v699_v30 = vmul.f32 -1.442695, %v418_v20  ;;  %v389_v31 = vadd.f32 %v949_v12, %v388_v27  ;;  %v421_v32 = vadd.f32 %v949_v12, %v420_v28 }
  0xfa   : > { %792 = vpow2.f32 %v693_v23  ;;  %v694_v33 = vmul.f32 -1.442695, %v397_v25  ;;  %v702_v34 = vmul.f32 -1.442695, %v429_v26 }
  0xfb   : > { %794 = vpow2.f32 %v701_v24  ;;  %v692_v35 = vmul.f32 -1.442695, %v389_v31  ;;  %v700_v36 = vmul.f32 -1.442695, %v421_v32 }
  0xfc   : > { %796 = vpow2.f32 %v691_v29 }
  0xfd   : > { %798 = vpow2.f32 %v699_v30  ;;  %v738_v37 = vpop.f32.mrb[4].mxu0  ;;  %v746_v38 = vpop.f32.mrb[4].mxu1 }
  0xfe   : > { %800 = vpow2.f32 %v694_v33  ;;  %v410_v39 = vadd.f32 %v738_v37, %v949_v12  ;;  %v442_v40 = vadd.f32 %v746_v38, %v949_v12  ;;  %v401_v41 = vpop.f32.mrb[5].mxu0  ;;  %v433_v42 = vpop.f32.mrb[5].mxu1 }
  0xff   : > { %802 = vpow2.f32 %v702_v34  ;;  %v402_v43 = vadd.f32 %v949_v12, %v401_v41  ;;  %v434_v44 = vadd.f32 %v949_v12, %v433_v42  ;;  %v739_v45 = vpop.f32.mrb[6].mxu0  ;;  %v747_v46 = vpop.f32.mrb[6].mxu1 }
 0x100   : > { %804 = vpow2.f32 %v692_v35  ;;  %v697_v47 = vmul.f32 -1.442695, %v410_v39  ;;  %v705_v48 = vmul.f32 -1.442695, %v442_v40  ;;  %v413_v49 = vadd.f32 %v739_v45, %v949_v12  ;;  %v404_v50 = vpop.f32.mrb[7].mxu0  ;;  %v436_v51 = vpop.f32.mrb[7].mxu1 }
 0x101   : > { %806 = vpow2.f32 %v700_v36  ;;  %v695_v52 = vmul.f32 -1.442695, %v402_v43  ;;  %v703_v53 = vmul.f32 -1.442695, %v434_v44  ;;  %v445_v8 = vadd.f32 %v747_v46, %v949_v12 }
 0x102   : > { %808 = vpow2.f32 %v697_v47  ;;  %v698_v54 = vmul.f32 -1.442695, %v413_v49  ;;  %v405_v11 = vadd.f32 %v949_v12, %v404_v50  ;;  %v437_v15 = vadd.f32 %v949_v12, %v436_v51 }
 0x103   : > { %810 = vpow2.f32 %v705_v48  ;;  %v706_v20 = vmul.f32 -1.442695, %v445_v8 }
 0x104   : > { %v793_v55 = vpop.eup %792  ;;  %812 = vpow2.f32 %v695_v52  ;;  %v696_v12 = vmul.f32 -1.442695, %v405_v11  ;;  %v704_v24 = vmul.f32 -1.442695, %v437_v15 }
 0x105   : > { %v795_v56 = vpop.eup %794  ;;  %v498_v57 = vadd.f32 1.0, %v793_v55  ;;  %814 = vpow2.f32 %v703_v53 }
 0x106   : > { %v797_v58 = vpop.eup %796  ;;  %v506_v59 = vadd.f32 1.0, %v795_v56  ;;  %816 = vpow2.f32 %v698_v54 }
 0x107   : > { %v799_v60 = vpop.eup %798  ;;  %818 = vrcp.f32 %v498_v57  ;;  %v496_v61 = vadd.f32 1.0, %v797_v58 }
 0x108   : > { %v801_v62 = vpop.eup %800  ;;  %820 = vrcp.f32 %v506_v59  ;;  %v504_v63 = vadd.f32 1.0, %v799_v60 }
 0x109   : > { %v803_v0 = vpop.eup %802  ;;  %822 = vrcp.f32 %v496_v61  ;;  %v499_v1 = vadd.f32 1.0, %v801_v62 }
 0x10a   : > { %v805_v2 = vpop.eup %804  ;;  %824 = vrcp.f32 %v504_v63  ;;  %v507_v3 = vadd.f32 1.0, %v803_v0 }
 0x10b   : > { %v807_v4 = vpop.eup %806  ;;  %826 = vrcp.f32 %v499_v1  ;;  %v497_v5 = vadd.f32 1.0, %v805_v2 }
 0x10c   : > { %v809_v6 = vpop.eup %808  ;;  %828 = vrcp.f32 %v507_v3  ;;  %v505_v7 = vadd.f32 1.0, %v807_v4 }
 0x10d   : > { %v811_v9 = vpop.eup %810  ;;  %830 = vrcp.f32 %v497_v5  ;;  %v502_v10 = vadd.f32 1.0, %v809_v6 }
 0x10e   : > { %v813_v13 = vpop.eup %812  ;;  %832 = vrcp.f32 %v505_v7  ;;  %v510_v14 = vadd.f32 1.0, %v811_v9 }
 0x10f   : > { %v815_v16 = vpop.eup %814  ;;  %834 = vrcp.f32 %v502_v10  ;;  %v500_v17 = vadd.f32 1.0, %v813_v13 }
 0x110   : > { %v817_v18 = vpop.eup %816  ;;  %836 = vrcp.f32 %v510_v14  ;;  %v508_v19 = vadd.f32 1.0, %v815_v16 }
 0x111   : > { %v819_v21 = vpop.eup %818  ;;  %838 = vrcp.f32 %v500_v17  ;;  %v503_v22 = vadd.f32 1.0, %v817_v18 }
 0x112   : > { %v821_v23 = vpop.eup %820  ;;  %546 = vst [vmem:[%s971_s29 + $0x10] sm:$0xff] %v819_v21  ;;  %840 = vrcp.f32 %v508_v19 }
 0x113   : > { %v823_v25 = vpop.eup %822  ;;  %554 = vst [vmem:[%s971_s29 + $0x50] sm:$0xff] %v821_v23  ;;  %842 = vrcp.f32 %v503_v22 }
 0x114   : > { %v825_v26 = vpop.eup %824  ;;  %544 = vst [vmem:[%s971_s29] sm:$0xff] %v823_v25  ;;  %844 = vpow2.f32 %v706_v20 }
 0x115   : > { %v827_v27 = vpop.eup %826  ;;  %552 = vst [vmem:[%s971_s29 + $0x40] sm:$0xff] %v825_v26  ;;  %846 = vpow2.f32 %v696_v12 }
 0x116   : > { %v829_v28 = vpop.eup %828  ;;  %547 = vst [vmem:[%s971_s29 + $0x18] sm:$0xff] %v827_v27  ;;  %848 = vpow2.f32 %v704_v24 }
 0x117   : > { %v831_v29 = vpop.eup %830  ;;  %555 = vst [vmem:[%s971_s29 + $0x58] sm:$0xff] %v829_v28 }
 0x118   : > { %v833_v30 = vpop.eup %832  ;;  %545 = vst [vmem:[%s971_s29 + $0x8] sm:$0xff] %v831_v29 }
 0x119   : > { %v835_v31 = vpop.eup %834  ;;  %553 = vst [vmem:[%s971_s29 + $0x48] sm:$0xff] %v833_v30 }
 0x11a   : > { %v837_v32 = vpop.eup %836  ;;  %550 = vst [vmem:[%s971_s29 + $0x30] sm:$0xff] %v835_v31 }
 0x11b   : > { %v839_v33 = vpop.eup %838  ;;  %558 = vst [vmem:[%s971_s29 + $0x70] sm:$0xff] %v837_v32 }
 0x11c   : > { %v841_v34 = vpop.eup %840  ;;  %548 = vst [vmem:[%s971_s29 + $0x20] sm:$0xff] %v839_v33 }
 0x11d   : > { %v843_v35 = vpop.eup %842  ;;  %556 = vst [vmem:[%s971_s29 + $0x60] sm:$0xff] %v841_v34 }
 0x11e   : > { %v845_v36 = vpop.eup %844  ;;  %551 = vst [vmem:[%s971_s29 + $0x38] sm:$0xff] %v843_v35 }
 0x11f   : > { %v847_v37 = vpop.eup %846  ;;  %v511_v38 = vadd.f32 1.0, %v845_v36 }
 0x120   : > { %v849_v39 = vpop.eup %848  ;;  %v501_v40 = vadd.f32 1.0, %v847_v37 }
 0x121   : > { %850 = vrcp.f32 %v511_v38  ;;  %v509_v41 = vadd.f32 1.0, %v849_v39 }
 0x122   : > { %852 = vrcp.f32 %v501_v40 }
 0x123   : > { %854 = vrcp.f32 %v509_v41 }
 0x12b   : > { %v851_v42 = vpop.eup %850 }
 0x12c   : > { %v853_v43 = vpop.eup %852  ;;  %559 = vst [vmem:[%s971_s29 + $0x78] sm:$0xff] %v851_v42 }
 0x12d   : > { %v855_v44 = vpop.eup %854  ;;  %549 = vst [vmem:[%s971_s29 + $0x28] sm:$0xff] %v853_v43 }
 0x12e   : > { %557 = vst [vmem:[%s971_s29 + $0x68] sm:$0xff] %v855_v44 }
 0x12f PF: > { %s13_s14 = sadd.s32 1, %s878_s14   ;;  %s1002_s12 = smov %s874_s13 }
 0x130   : > { %p10_p5 = scmp.ge.s32.totalorder %s13_s14, 6   ;;  %s1003_s13 = smov %s1005_s15 }
 0x132   :  { %12 = sbr.rel (!%p10_p5) target bundleno = 2 (0x2), region = 65 }

</bundles_post_ra>
